<compile_context>
chip_gen: v6e
topology: v6e:2x2x1
jax: 0.10.0
libtpu: 0.0.40
codegen_flags: <defaults>
</compile_context>

<pallas_src>
import functools

import jax
import jax.numpy as jnp
import numpy as np
from jax import lax
from jax.experimental import pallas as pl
from jax.experimental.pallas import tpu as pltpu


# ----------------------------------------------------------------------------
# Pallas kernel: full forward pass for one small problem instance in VMEM.
# ----------------------------------------------------------------------------
def ts_autoencoder_kernel(
    x_ref,        # (T*Bp, D)   time-major input rows (row = t*Bp + b), batch padded
    wih_e_ref,    # (D, 4H)     encoder W_ih^T, i/f/o gate cols pre-scaled by 0.5
    whh_e_ref,    # (H, 4H)     encoder W_hh^T, i/f/o gate cols pre-scaled by 0.5
    b_e_ref,      # (1, 4H)     encoder b_ih + b_hh, i/f/o entries pre-scaled by 0.5
    wmid_ref,     # (H, 4H+L)   [ gate-scaled (Wlat^T @ Wih_d^T) | Wlat^T ]
    bmid_ref,     # (1, 4H+L)   [ gate-scaled fused decoder-input bias | b_lat ]
    whh_d_ref,    # (H, 4H)     decoder W_hh^T, i/f/o gate cols pre-scaled by 0.5
    wout_ref,     # (H, D)      output Linear weight^T
    bout_ref,     # (1, D)      output Linear bias
    recon_ref,    # (T*Bp, D)   reconstructed output (time-major rows)
    z_ref,        # (Bp, L)     latent code
    *,
    seq_len: int,
    batch_padded: int,
    hidden_dim: int,
    latent_dim: int,
):
    T, Bp, H, L = seq_len, batch_padded, hidden_dim, latent_dim

    def lstm_gates(pre, c):
        # i/f/o gate columns were pre-scaled by 0.5 in the wrapper, so
        # sigmoid(x) = 0.5*tanh(x/2) + 0.5 collapses all four gate
        # nonlinearities into ONE full-tile tanh (one EUP push instead of four).
        t = jnp.tanh(pre)                    # (Bp, 4H): single EUP pass
        s = 0.5 * t + 0.5                    # sigmoid of original i/f/o pre-acts
        i = s[:, 0 * H:1 * H]
        f = s[:, 1 * H:2 * H]
        g = t[:, 2 * H:3 * H]                # g column unscaled -> true tanh
        o = s[:, 3 * H:4 * H]
        c_new = f * c + i * g
        h_new = o * jnp.tanh(c_new)          # second (and last) EUP push per step
        return h_new, c_new

    # ---- encoder: one big (T*Bp, D) @ (D, 4H) input projection off the serial
    # critical path; the recurrence only carries h @ W_hh. Bp is a multiple of 8,
    # so every per-step slice below is sublane-tile aligned (no masked access). ----
    x_proj = (jnp.dot(x_ref[...], wih_e_ref[...],
                      preferred_element_type=jnp.float32)
              + b_e_ref[...])                                    # (T*Bp, 4H)
    whh_e = whh_e_ref[...]

    h = jnp.zeros((Bp, H), jnp.float32)
    c = jnp.zeros((Bp, H), jnp.float32)
    for t in range(T):  # T is small & static -> full unroll
        pre = (x_proj[t * Bp:(t + 1) * Bp, :]
               + jnp.dot(h, whh_e, preferred_element_type=jnp.float32))
        h, c = lstm_gates(pre, c)
    h_enc = h

    # ---- latent Linear + fused latent->decoder-input projection as ONE matmul.
    # z_pre (critical path) is the lane-aligned first 4H lanes; z is the tail. ----
    mid = (jnp.dot(h_enc, wmid_ref[...], preferred_element_type=jnp.float32)
           + bmid_ref[...])                                      # (Bp, 4H+L)
    z_pre = mid[:, :4 * H]                                       # (Bp, 4H)
    z_ref[...] = mid[:, 4 * H:]                                  # (Bp, L)

    # ---- decoder recurrence: only h @ W_hh per step; keep every h_t in vregs ----
    whh_d = whh_d_ref[...]
    h = jnp.zeros((Bp, H), jnp.float32)
    c = jnp.zeros((Bp, H), jnp.float32)
    hs = []
    for t in range(T):  # full unroll
        pre = z_pre + jnp.dot(h, whh_d, preferred_element_type=jnp.float32)
        h, c = lstm_gates(pre, c)
        hs.append(h)
    h_all = jnp.concatenate(hs, axis=0)                          # (T*Bp, H)

    # ---- single hoisted output projection + one store ----
    recon_ref[...] = (jnp.dot(h_all, wout_ref[...],
                              preferred_element_type=jnp.float32)
                      + bout_ref[...])


# ----------------------------------------------------------------------------
# Wrapper
# ----------------------------------------------------------------------------
def ts_autoencoder_forward(x, params):
    """x: (B, T, D) batch-first float32. Returns (reconstructed (B,T,D), z (B,L))."""
    B, T, D = x.shape
    H = params["whh_e"].shape[1]          # encoder weight_hh: (4H, H)
    L = params["w_lat"].shape[0]          # latent Linear weight: (L, H)

    # pad the batch up to one sublane tile (multiple of 8) with zero rows; the
    # padded rows compute deterministic junk and are dropped after the kernel.
    Bp = ((B + 7) // 8) * 8
    x_pad = jnp.zeros((Bp, T, D), jnp.float32).at[:B].set(x.astype(jnp.float32))
    # time-major rows, flattened so the kernel never reshapes: row = t*Bp + b
    x_tm = jnp.transpose(x_pad, (1, 0, 2)).reshape(T * Bp, D)

    # per-gate column scaling: sigmoid(x) = 0.5*tanh(x/2)+0.5 -> scale i/f/o by 0.5
    gate_scale = jnp.concatenate([
        jnp.full((H,), 0.5, jnp.float32),   # i
        jnp.full((H,), 0.5, jnp.float32),   # f
        jnp.ones((H,), jnp.float32),        # g (true tanh, unscaled)
        jnp.full((H,), 0.5, jnp.float32),   # o
    ])

    # pre-transpose weights, fold the two LSTM biases together, apply gate scale
    wih_e_t = params["wih_e"].T * gate_scale                       # (D, 4H)
    whh_e_t = params["whh_e"].T * gate_scale                       # (H, 4H)
    b_e = ((params["bih_e"] + params["bhh_e"]) * gate_scale)[None, :]

    wlat_t = params["w_lat"].T                                     # (H, L)
    blat = params["b_lat"][None, :]                                # (1, L)
    wih_d_t = params["wih_d"].T                                    # (L, 4H)
    whh_d_t = params["whh_d"].T * gate_scale                       # (H, 4H)
    b_d = (params["bih_d"] + params["bhh_d"])[None, :]             # (1, 4H)
    wout_t = params["w_out"].T                                     # (H, D)
    bout = params["b_out"][None, :]                                # (1, D)

    # fold the latent Linear into the decoder input projection (done once,
    # outside the kernel; full f32 precision so the fusion stays accurate)
    hp = lax.Precision.HIGHEST
    w_fuse = jnp.dot(wlat_t, wih_d_t, precision=hp) * gate_scale          # (H, 4H)
    b_fuse = (jnp.dot(blat, wih_d_t, precision=hp) + b_d) * gate_scale    # (1, 4H)

    # single fused matmul weight for [decoder-input-pre | latent z]
    wmid = jnp.concatenate([w_fuse, wlat_t], axis=1)               # (H, 4H+L)
    bmid = jnp.concatenate([b_fuse, blat], axis=1)                 # (1, 4H+L)

    vmem = pl.BlockSpec(memory_space=pltpu.MemorySpace.VMEM)
    recon_flat, z_pad = pl.pallas_call(
        functools.partial(ts_autoencoder_kernel, seq_len=T,
                          batch_padded=Bp, hidden_dim=H, latent_dim=L),
        out_shape=(
            jax.ShapeDtypeStruct((T * Bp, D), jnp.float32),
            jax.ShapeDtypeStruct((Bp, L), jnp.float32),
        ),
        in_specs=[vmem] * 9,
        out_specs=(vmem, vmem),
        compiler_params=pltpu.CompilerParams(
            vmem_limit_bytes=2 * 1024 * 1024),
    )(x_tm, wih_e_t, whh_e_t, b_e, wmid, bmid, whh_d_t, wout_t, bout)

    reconstructed = jnp.transpose(
        recon_flat.reshape(T, Bp, D)[:, :B, :], (1, 0, 2))
    return reconstructed, z_pad[:B]


# ----------------------------------------------------------------------------
# Deterministic parameter init (PyTorch-style uniform(-1/sqrt(fan), 1/sqrt(fan)))
# ----------------------------------------------------------------------------
def init_params(key, input_dim, latent_dim, hidden_dim):
    keys = jax.random.split(key, 16)
    k_lstm = 1.0 / np.sqrt(hidden_dim)
    k_lat = 1.0 / np.sqrt(hidden_dim)
    k_out = 1.0 / np.sqrt(hidden_dim)

    def u(k, shape, scale):
        return jax.random.uniform(k, shape, jnp.float32, -scale, scale)

    return {
        # encoder LSTM(input_dim -> hidden_dim)
        "wih_e": u(keys[0], (4 * hidden_dim, input_dim), k_lstm),
        "whh_e": u(keys[1], (4 * hidden_dim, hidden_dim), k_lstm),
        "bih_e": u(keys[2], (4 * hidden_dim,), k_lstm),
        "bhh_e": u(keys[3], (4 * hidden_dim,), k_lstm),
        # latent Linear(hidden_dim -> latent_dim)
        "w_lat": u(keys[4], (latent_dim, hidden_dim), k_lat),
        "b_lat": u(keys[5], (latent_dim,), k_lat),
        # decoder LSTM(latent_dim -> hidden_dim)
        "wih_d": u(keys[6], (4 * hidden_dim, latent_dim), k_lstm),
        "whh_d": u(keys[7], (4 * hidden_dim, hidden_dim), k_lstm),
        "bih_d": u(keys[8], (4 * hidden_dim,), k_lstm),
        "bhh_d": u(keys[9], (4 * hidden_dim,), k_lstm),
        # output Linear(hidden_dim -> input_dim)
        "w_out": u(keys[10], (input_dim, hidden_dim), k_out),
        "b_out": u(keys[11], (input_dim,), k_out),
    }


# ----------------------------------------------------------------------------
# Pure-JAX reference (mirrors the PyTorch forward exactly) for verification
# ----------------------------------------------------------------------------
def reference_forward(x, params):
    B, T, D = x.shape
    H = params["whh_e"].shape[1]

    def lstm(xseq, wih, whh, bih, bhh):
        def cell(carry, x_t):
            h, c = carry
            pre = x_t @ wih.T + bih + h @ whh.T + bhh
            i, f, g, o = jnp.split(pre, 4, axis=-1)
            i, f, o = jax.nn.sigmoid(i), jax.nn.sigmoid(f), jax.nn.sigmoid(o)
            g = jnp.tanh(g)
            c_new = f * c + i * g
            h_new = o * jnp.tanh(c_new)
            return (h_new, c_new), h_new

        h0 = jnp.zeros((B, H), jnp.float32)
        (h_last, _), hs = lax.scan(cell, (h0, h0), jnp.transpose(xseq, (1, 0, 2)))
        return jnp.transpose(hs, (1, 0, 2)), h_last

    _, h_last = lstm(x, params["wih_e"], params["whh_e"],
                     params["bih_e"], params["bhh_e"])
    z = h_last @ params["w_lat"].T + params["b_lat"]
    z_exp = jnp.repeat(z[:, None, :], T, axis=1)
    decoded, _ = lstm(z_exp, params["wih_d"], params["whh_d"],
                      params["bih_d"], params["bhh_d"])
    reconstructed = decoded @ params["w_out"].T + params["b_out"]
    return reconstructed, z


if __name__ == "__main__":
    # small shapes consistent with the module's forward
    batch, seq, input_dim, hidden_dim, latent_dim = 2, 8, 4, 32, 16

    key = jax.random.PRNGKey(0)
    k_x, k_p = jax.random.split(key)
    x = jax.random.normal(k_x, (batch, seq, input_dim), jnp.float32)
    params = init_params(k_p, input_dim, latent_dim, hidden_dim)

    recon, z = ts_autoencoder_forward(x, params)
    recon = jax.block_until_ready(recon)
    z = jax.block_until_ready(z)

    recon_ref, z_ref = reference_forward(x, params)
    assert recon.shape == (batch, seq, input_dim)
    assert z.shape == (batch, latent_dim)
    # tolerance 1e-4: the fused latent->decoder projection and the
    # sigmoid-via-half-tanh gate trick change f32 summation/rounding order
    # by a few ULP relative to the unfused reference.
    np.testing.assert_allclose(np.asarray(recon), np.asarray(recon_ref),
                               rtol=1e-4, atol=1e-4)
    np.testing.assert_allclose(np.asarray(z), np.asarray(z_ref),
                               rtol=1e-4, atol=1e-4)

    print("KERNEL_OK")
</pallas_src>

<mosaic_0001>
module attributes {stable_mosaic.version = 11 : i64} {
  func.func @ts_autoencoder_kernel(%arg0: memref<64x4xf32, #tpu.memory_space<vmem>>, %arg1: memref<4x128xf32, #tpu.memory_space<vmem>>, %arg2: memref<32x128xf32, #tpu.memory_space<vmem>>, %arg3: memref<1x128xf32, #tpu.memory_space<vmem>>, %arg4: memref<32x144xf32, #tpu.memory_space<vmem>>, %arg5: memref<1x144xf32, #tpu.memory_space<vmem>>, %arg6: memref<32x128xf32, #tpu.memory_space<vmem>>, %arg7: memref<32x4xf32, #tpu.memory_space<vmem>>, %arg8: memref<1x4xf32, #tpu.memory_space<vmem>>, %arg9: memref<64x4xf32, #tpu.memory_space<vmem>>, %arg10: memref<8x16xf32, #tpu.memory_space<vmem>>) attributes {dimension_semantics = [], scalar_prefetch = 0 : i64, scratch_operands = 0 : i64, tpu.core_type = #tpu.core_type<tc>} {
    %c0 = arith.constant 0 : index
    %c0_0 = arith.constant 0 : index
    %0 = vector.load %arg0[%c0, %c0_0] : memref<64x4xf32, #tpu.memory_space<vmem>>, vector<64x4xf32>
    %c0_1 = arith.constant 0 : index
    %c0_2 = arith.constant 0 : index
    %1 = vector.load %arg1[%c0_1, %c0_2] : memref<4x128xf32, #tpu.memory_space<vmem>>, vector<4x128xf32>
    %cst = arith.constant dense<0.000000e+00> : vector<64x128xf32>
    %2 = tpu.matmul %0, %1, %cst {dimension_numbers = #tpu.dot_dimension_numbers<[1], [0], [0], [1], [0, 0, 1, 1], [], []>} : vector<64x4xf32>, vector<4x128xf32>, vector<64x128xf32> -> vector<64x128xf32>
    %c0_3 = arith.constant 0 : index
    %c0_4 = arith.constant 0 : index
    %3 = vector.load %arg3[%c0_3, %c0_4] : memref<1x128xf32, #tpu.memory_space<vmem>>, vector<1x128xf32>
    %4 = vector.broadcast %3 : vector<1x128xf32> to vector<64x128xf32>
    %5 = arith.addf %2, %4 : vector<64x128xf32>
    %c0_5 = arith.constant 0 : index
    %c0_6 = arith.constant 0 : index
    %6 = vector.load %arg2[%c0_5, %c0_6] : memref<32x128xf32, #tpu.memory_space<vmem>>, vector<32x128xf32>
    %cst_7 = arith.constant 0.000000e+00 : f32
    %7 = vector.broadcast %cst_7 : f32 to vector<8x32xf32>
    %cst_8 = arith.constant 0.000000e+00 : f32
    %8 = vector.broadcast %cst_8 : f32 to vector<8x32xf32>
    %9 = vector.extract_strided_slice %5 {offsets = [0, 0], sizes = [8, 128], strides = [1, 1]} : vector<64x128xf32> to vector<8x128xf32>
    %cst_9 = arith.constant dense<0.000000e+00> : vector<8x128xf32>
    %10 = tpu.matmul %7, %6, %cst_9 {dimension_numbers = #tpu.dot_dimension_numbers<[1], [0], [0], [1], [0, 0, 1, 1], [], []>} : vector<8x32xf32>, vector<32x128xf32>, vector<8x128xf32> -> vector<8x128xf32>
    %11 = arith.addf %9, %10 : vector<8x128xf32>
    %12 = math.tanh %11 : vector<8x128xf32>
    %cst_10 = arith.constant 5.000000e-01 : f32
    %13 = vector.broadcast %cst_10 : f32 to vector<8x128xf32>
    %14 = arith.mulf %13, %12 : vector<8x128xf32>
    %cst_11 = arith.constant 5.000000e-01 : f32
    %15 = vector.broadcast %cst_11 : f32 to vector<8x128xf32>
    %16 = arith.addf %14, %15 : vector<8x128xf32>
    %17 = vector.extract_strided_slice %16 {offsets = [0, 0], sizes = [8, 32], strides = [1, 1]} : vector<8x128xf32> to vector<8x32xf32>
    %18 = vector.extract_strided_slice %16 {offsets = [0, 32], sizes = [8, 32], strides = [1, 1]} : vector<8x128xf32> to vector<8x32xf32>
    %19 = vector.extract_strided_slice %12 {offsets = [0, 64], sizes = [8, 32], strides = [1, 1]} : vector<8x128xf32> to vector<8x32xf32>
    %20 = vector.extract_strided_slice %16 {offsets = [0, 96], sizes = [8, 32], strides = [1, 1]} : vector<8x128xf32> to vector<8x32xf32>
    %21 = arith.mulf %18, %8 : vector<8x32xf32>
    %22 = arith.mulf %17, %19 : vector<8x32xf32>
    %23 = arith.addf %21, %22 : vector<8x32xf32>
    %24 = math.tanh %23 : vector<8x32xf32>
    %25 = arith.mulf %20, %24 : vector<8x32xf32>
    %26 = vector.extract_strided_slice %5 {offsets = [8, 0], sizes = [8, 128], strides = [1, 1]} : vector<64x128xf32> to vector<8x128xf32>
    %cst_12 = arith.constant dense<0.000000e+00> : vector<8x128xf32>
    %27 = tpu.matmul %25, %6, %cst_12 {dimension_numbers = #tpu.dot_dimension_numbers<[1], [0], [0], [1], [0, 0, 1, 1], [], []>} : vector<8x32xf32>, vector<32x128xf32>, vector<8x128xf32> -> vector<8x128xf32>
    %28 = arith.addf %26, %27 : vector<8x128xf32>
    %29 = math.tanh %28 : vector<8x128xf32>
    %cst_13 = arith.constant 5.000000e-01 : f32
    %30 = vector.broadcast %cst_13 : f32 to vector<8x128xf32>
    %31 = arith.mulf %30, %29 : vector<8x128xf32>
    %cst_14 = arith.constant 5.000000e-01 : f32
    %32 = vector.broadcast %cst_14 : f32 to vector<8x128xf32>
    %33 = arith.addf %31, %32 : vector<8x128xf32>
    %34 = vector.extract_strided_slice %33 {offsets = [0, 0], sizes = [8, 32], strides = [1, 1]} : vector<8x128xf32> to vector<8x32xf32>
    %35 = vector.extract_strided_slice %33 {offsets = [0, 32], sizes = [8, 32], strides = [1, 1]} : vector<8x128xf32> to vector<8x32xf32>
    %36 = vector.extract_strided_slice %29 {offsets = [0, 64], sizes = [8, 32], strides = [1, 1]} : vector<8x128xf32> to vector<8x32xf32>
    %37 = vector.extract_strided_slice %33 {offsets = [0, 96], sizes = [8, 32], strides = [1, 1]} : vector<8x128xf32> to vector<8x32xf32>
    %38 = arith.mulf %35, %23 : vector<8x32xf32>
    %39 = arith.mulf %34, %36 : vector<8x32xf32>
    %40 = arith.addf %38, %39 : vector<8x32xf32>
    %41 = math.tanh %40 : vector<8x32xf32>
    %42 = arith.mulf %37, %41 : vector<8x32xf32>
    %43 = vector.extract_strided_slice %5 {offsets = [16, 0], sizes = [8, 128], strides = [1, 1]} : vector<64x128xf32> to vector<8x128xf32>
    %cst_15 = arith.constant dense<0.000000e+00> : vector<8x128xf32>
    %44 = tpu.matmul %42, %6, %cst_15 {dimension_numbers = #tpu.dot_dimension_numbers<[1], [0], [0], [1], [0, 0, 1, 1], [], []>} : vector<8x32xf32>, vector<32x128xf32>, vector<8x128xf32> -> vector<8x128xf32>
    %45 = arith.addf %43, %44 : vector<8x128xf32>
    %46 = math.tanh %45 : vector<8x128xf32>
    %cst_16 = arith.constant 5.000000e-01 : f32
    %47 = vector.broadcast %cst_16 : f32 to vector<8x128xf32>
    %48 = arith.mulf %47, %46 : vector<8x128xf32>
    %cst_17 = arith.constant 5.000000e-01 : f32
    %49 = vector.broadcast %cst_17 : f32 to vector<8x128xf32>
    %50 = arith.addf %48, %49 : vector<8x128xf32>
    %51 = vector.extract_strided_slice %50 {offsets = [0, 0], sizes = [8, 32], strides = [1, 1]} : vector<8x128xf32> to vector<8x32xf32>
    %52 = vector.extract_strided_slice %50 {offsets = [0, 32], sizes = [8, 32], strides = [1, 1]} : vector<8x128xf32> to vector<8x32xf32>
    %53 = vector.extract_strided_slice %46 {offsets = [0, 64], sizes = [8, 32], strides = [1, 1]} : vector<8x128xf32> to vector<8x32xf32>
    %54 = vector.extract_strided_slice %50 {offsets = [0, 96], sizes = [8, 32], strides = [1, 1]} : vector<8x128xf32> to vector<8x32xf32>
    %55 = arith.mulf %52, %40 : vector<8x32xf32>
    %56 = arith.mulf %51, %53 : vector<8x32xf32>
    %57 = arith.addf %55, %56 : vector<8x32xf32>
    %58 = math.tanh %57 : vector<8x32xf32>
    %59 = arith.mulf %54, %58 : vector<8x32xf32>
    %60 = vector.extract_strided_slice %5 {offsets = [24, 0], sizes = [8, 128], strides = [1, 1]} : vector<64x128xf32> to vector<8x128xf32>
    %cst_18 = arith.constant dense<0.000000e+00> : vector<8x128xf32>
    %61 = tpu.matmul %59, %6, %cst_18 {dimension_numbers = #tpu.dot_dimension_numbers<[1], [0], [0], [1], [0, 0, 1, 1], [], []>} : vector<8x32xf32>, vector<32x128xf32>, vector<8x128xf32> -> vector<8x128xf32>
    %62 = arith.addf %60, %61 : vector<8x128xf32>
    %63 = math.tanh %62 : vector<8x128xf32>
    %cst_19 = arith.constant 5.000000e-01 : f32
    %64 = vector.broadcast %cst_19 : f32 to vector<8x128xf32>
    %65 = arith.mulf %64, %63 : vector<8x128xf32>
    %cst_20 = arith.constant 5.000000e-01 : f32
    %66 = vector.broadcast %cst_20 : f32 to vector<8x128xf32>
    %67 = arith.addf %65, %66 : vector<8x128xf32>
    %68 = vector.extract_strided_slice %67 {offsets = [0, 0], sizes = [8, 32], strides = [1, 1]} : vector<8x128xf32> to vector<8x32xf32>
    %69 = vector.extract_strided_slice %67 {offsets = [0, 32], sizes = [8, 32], strides = [1, 1]} : vector<8x128xf32> to vector<8x32xf32>
    %70 = vector.extract_strided_slice %63 {offsets = [0, 64], sizes = [8, 32], strides = [1, 1]} : vector<8x128xf32> to vector<8x32xf32>
    %71 = vector.extract_strided_slice %67 {offsets = [0, 96], sizes = [8, 32], strides = [1, 1]} : vector<8x128xf32> to vector<8x32xf32>
    %72 = arith.mulf %69, %57 : vector<8x32xf32>
    %73 = arith.mulf %68, %70 : vector<8x32xf32>
    %74 = arith.addf %72, %73 : vector<8x32xf32>
    %75 = math.tanh %74 : vector<8x32xf32>
    %76 = arith.mulf %71, %75 : vector<8x32xf32>
    %77 = vector.extract_strided_slice %5 {offsets = [32, 0], sizes = [8, 128], strides = [1, 1]} : vector<64x128xf32> to vector<8x128xf32>
    %cst_21 = arith.constant dense<0.000000e+00> : vector<8x128xf32>
    %78 = tpu.matmul %76, %6, %cst_21 {dimension_numbers = #tpu.dot_dimension_numbers<[1], [0], [0], [1], [0, 0, 1, 1], [], []>} : vector<8x32xf32>, vector<32x128xf32>, vector<8x128xf32> -> vector<8x128xf32>
    %79 = arith.addf %77, %78 : vector<8x128xf32>
    %80 = math.tanh %79 : vector<8x128xf32>
    %cst_22 = arith.constant 5.000000e-01 : f32
    %81 = vector.broadcast %cst_22 : f32 to vector<8x128xf32>
    %82 = arith.mulf %81, %80 : vector<8x128xf32>
    %cst_23 = arith.constant 5.000000e-01 : f32
    %83 = vector.broadcast %cst_23 : f32 to vector<8x128xf32>
    %84 = arith.addf %82, %83 : vector<8x128xf32>
    %85 = vector.extract_strided_slice %84 {offsets = [0, 0], sizes = [8, 32], strides = [1, 1]} : vector<8x128xf32> to vector<8x32xf32>
    %86 = vector.extract_strided_slice %84 {offsets = [0, 32], sizes = [8, 32], strides = [1, 1]} : vector<8x128xf32> to vector<8x32xf32>
    %87 = vector.extract_strided_slice %80 {offsets = [0, 64], sizes = [8, 32], strides = [1, 1]} : vector<8x128xf32> to vector<8x32xf32>
    %88 = vector.extract_strided_slice %84 {offsets = [0, 96], sizes = [8, 32], strides = [1, 1]} : vector<8x128xf32> to vector<8x32xf32>
    %89 = arith.mulf %86, %74 : vector<8x32xf32>
    %90 = arith.mulf %85, %87 : vector<8x32xf32>
    %91 = arith.addf %89, %90 : vector<8x32xf32>
    %92 = math.tanh %91 : vector<8x32xf32>
    %93 = arith.mulf %88, %92 : vector<8x32xf32>
    %94 = vector.extract_strided_slice %5 {offsets = [40, 0], sizes = [8, 128], strides = [1, 1]} : vector<64x128xf32> to vector<8x128xf32>
    %cst_24 = arith.constant dense<0.000000e+00> : vector<8x128xf32>
    %95 = tpu.matmul %93, %6, %cst_24 {dimension_numbers = #tpu.dot_dimension_numbers<[1], [0], [0], [1], [0, 0, 1, 1], [], []>} : vector<8x32xf32>, vector<32x128xf32>, vector<8x128xf32> -> vector<8x128xf32>
    %96 = arith.addf %94, %95 : vector<8x128xf32>
    %97 = math.tanh %96 : vector<8x128xf32>
    %cst_25 = arith.constant 5.000000e-01 : f32
    %98 = vector.broadcast %cst_25 : f32 to vector<8x128xf32>
    %99 = arith.mulf %98, %97 : vector<8x128xf32>
    %cst_26 = arith.constant 5.000000e-01 : f32
    %100 = vector.broadcast %cst_26 : f32 to vector<8x128xf32>
    %101 = arith.addf %99, %100 : vector<8x128xf32>
    %102 = vector.extract_strided_slice %101 {offsets = [0, 0], sizes = [8, 32], strides = [1, 1]} : vector<8x128xf32> to vector<8x32xf32>
    %103 = vector.extract_strided_slice %101 {offsets = [0, 32], sizes = [8, 32], strides = [1, 1]} : vector<8x128xf32> to vector<8x32xf32>
    %104 = vector.extract_strided_slice %97 {offsets = [0, 64], sizes = [8, 32], strides = [1, 1]} : vector<8x128xf32> to vector<8x32xf32>
    %105 = vector.extract_strided_slice %101 {offsets = [0, 96], sizes = [8, 32], strides = [1, 1]} : vector<8x128xf32> to vector<8x32xf32>
    %106 = arith.mulf %103, %91 : vector<8x32xf32>
    %107 = arith.mulf %102, %104 : vector<8x32xf32>
    %108 = arith.addf %106, %107 : vector<8x32xf32>
    %109 = math.tanh %108 : vector<8x32xf32>
    %110 = arith.mulf %105, %109 : vector<8x32xf32>
    %111 = vector.extract_strided_slice %5 {offsets = [48, 0], sizes = [8, 128], strides = [1, 1]} : vector<64x128xf32> to vector<8x128xf32>
    %cst_27 = arith.constant dense<0.000000e+00> : vector<8x128xf32>
    %112 = tpu.matmul %110, %6, %cst_27 {dimension_numbers = #tpu.dot_dimension_numbers<[1], [0], [0], [1], [0, 0, 1, 1], [], []>} : vector<8x32xf32>, vector<32x128xf32>, vector<8x128xf32> -> vector<8x128xf32>
    %113 = arith.addf %111, %112 : vector<8x128xf32>
    %114 = math.tanh %113 : vector<8x128xf32>
    %cst_28 = arith.constant 5.000000e-01 : f32
    %115 = vector.broadcast %cst_28 : f32 to vector<8x128xf32>
    %116 = arith.mulf %115, %114 : vector<8x128xf32>
    %cst_29 = arith.constant 5.000000e-01 : f32
    %117 = vector.broadcast %cst_29 : f32 to vector<8x128xf32>
    %118 = arith.addf %116, %117 : vector<8x128xf32>
    %119 = vector.extract_strided_slice %118 {offsets = [0, 0], sizes = [8, 32], strides = [1, 1]} : vector<8x128xf32> to vector<8x32xf32>
    %120 = vector.extract_strided_slice %118 {offsets = [0, 32], sizes = [8, 32], strides = [1, 1]} : vector<8x128xf32> to vector<8x32xf32>
    %121 = vector.extract_strided_slice %114 {offsets = [0, 64], sizes = [8, 32], strides = [1, 1]} : vector<8x128xf32> to vector<8x32xf32>
    %122 = vector.extract_strided_slice %118 {offsets = [0, 96], sizes = [8, 32], strides = [1, 1]} : vector<8x128xf32> to vector<8x32xf32>
    %123 = arith.mulf %120, %108 : vector<8x32xf32>
    %124 = arith.mulf %119, %121 : vector<8x32xf32>
    %125 = arith.addf %123, %124 : vector<8x32xf32>
    %126 = math.tanh %125 : vector<8x32xf32>
    %127 = arith.mulf %122, %126 : vector<8x32xf32>
    %128 = vector.extract_strided_slice %5 {offsets = [56, 0], sizes = [8, 128], strides = [1, 1]} : vector<64x128xf32> to vector<8x128xf32>
    %cst_30 = arith.constant dense<0.000000e+00> : vector<8x128xf32>
    %129 = tpu.matmul %127, %6, %cst_30 {dimension_numbers = #tpu.dot_dimension_numbers<[1], [0], [0], [1], [0, 0, 1, 1], [], []>} : vector<8x32xf32>, vector<32x128xf32>, vector<8x128xf32> -> vector<8x128xf32>
    %130 = arith.addf %128, %129 : vector<8x128xf32>
    %131 = math.tanh %130 : vector<8x128xf32>
    %cst_31 = arith.constant 5.000000e-01 : f32
    %132 = vector.broadcast %cst_31 : f32 to vector<8x128xf32>
    %133 = arith.mulf %132, %131 : vector<8x128xf32>
    %cst_32 = arith.constant 5.000000e-01 : f32
    %134 = vector.broadcast %cst_32 : f32 to vector<8x128xf32>
    %135 = arith.addf %133, %134 : vector<8x128xf32>
    %136 = vector.extract_strided_slice %135 {offsets = [0, 0], sizes = [8, 32], strides = [1, 1]} : vector<8x128xf32> to vector<8x32xf32>
    %137 = vector.extract_strided_slice %135 {offsets = [0, 32], sizes = [8, 32], strides = [1, 1]} : vector<8x128xf32> to vector<8x32xf32>
    %138 = vector.extract_strided_slice %131 {offsets = [0, 64], sizes = [8, 32], strides = [1, 1]} : vector<8x128xf32> to vector<8x32xf32>
    %139 = vector.extract_strided_slice %135 {offsets = [0, 96], sizes = [8, 32], strides = [1, 1]} : vector<8x128xf32> to vector<8x32xf32>
    %140 = arith.mulf %137, %125 : vector<8x32xf32>
    %141 = arith.mulf %136, %138 : vector<8x32xf32>
    %142 = arith.addf %140, %141 : vector<8x32xf32>
    %143 = math.tanh %142 : vector<8x32xf32>
    %144 = arith.mulf %139, %143 : vector<8x32xf32>
    %c0_33 = arith.constant 0 : index
    %c0_34 = arith.constant 0 : index
    %145 = vector.load %arg4[%c0_33, %c0_34] : memref<32x144xf32, #tpu.memory_space<vmem>>, vector<32x144xf32>
    %cst_35 = arith.constant dense<0.000000e+00> : vector<8x144xf32>
    %146 = tpu.matmul %144, %145, %cst_35 {dimension_numbers = #tpu.dot_dimension_numbers<[1], [0], [0], [1], [0, 0, 1, 1], [], []>} : vector<8x32xf32>, vector<32x144xf32>, vector<8x144xf32> -> vector<8x144xf32>
    %c0_36 = arith.constant 0 : index
    %c0_37 = arith.constant 0 : index
    %147 = vector.load %arg5[%c0_36, %c0_37] : memref<1x144xf32, #tpu.memory_space<vmem>>, vector<1x144xf32>
    %148 = vector.broadcast %147 : vector<1x144xf32> to vector<8x144xf32>
    %149 = arith.addf %146, %148 : vector<8x144xf32>
    %150 = vector.extract_strided_slice %149 {offsets = [0, 0], sizes = [8, 128], strides = [1, 1]} : vector<8x144xf32> to vector<8x128xf32>
    %151 = vector.extract_strided_slice %149 {offsets = [0, 128], sizes = [8, 16], strides = [1, 1]} : vector<8x144xf32> to vector<8x16xf32>
    %c0_38 = arith.constant 0 : index
    %c0_39 = arith.constant 0 : index
    %152 = vector.load %arg10[%c0_38, %c0_39] : memref<8x16xf32, #tpu.memory_space<vmem>>, vector<8x16xf32>
    tpu.vector_store %arg10[%c0_38, %c0_39], %151 {strides = array<i32>} : memref<8x16xf32, #tpu.memory_space<vmem>>, vector<8x16xf32>,
    %c0_40 = arith.constant 0 : index
    %c0_41 = arith.constant 0 : index
    %153 = vector.load %arg6[%c0_40, %c0_41] : memref<32x128xf32, #tpu.memory_space<vmem>>, vector<32x128xf32>
    %cst_42 = arith.constant 0.000000e+00 : f32
    %154 = vector.broadcast %cst_42 : f32 to vector<8x32xf32>
    %cst_43 = arith.constant 0.000000e+00 : f32
    %155 = vector.broadcast %cst_43 : f32 to vector<8x32xf32>
    %cst_44 = arith.constant dense<0.000000e+00> : vector<8x128xf32>
    %156 = tpu.matmul %154, %153, %cst_44 {dimension_numbers = #tpu.dot_dimension_numbers<[1], [0], [0], [1], [0, 0, 1, 1], [], []>} : vector<8x32xf32>, vector<32x128xf32>, vector<8x128xf32> -> vector<8x128xf32>
    %157 = arith.addf %150, %156 : vector<8x128xf32>
    %158 = math.tanh %157 : vector<8x128xf32>
    %cst_45 = arith.constant 5.000000e-01 : f32
    %159 = vector.broadcast %cst_45 : f32 to vector<8x128xf32>
    %160 = arith.mulf %159, %158 : vector<8x128xf32>
    %cst_46 = arith.constant 5.000000e-01 : f32
    %161 = vector.broadcast %cst_46 : f32 to vector<8x128xf32>
    %162 = arith.addf %160, %161 : vector<8x128xf32>
    %163 = vector.extract_strided_slice %162 {offsets = [0, 0], sizes = [8, 32], strides = [1, 1]} : vector<8x128xf32> to vector<8x32xf32>
    %164 = vector.extract_strided_slice %162 {offsets = [0, 32], sizes = [8, 32], strides = [1, 1]} : vector<8x128xf32> to vector<8x32xf32>
    %165 = vector.extract_strided_slice %158 {offsets = [0, 64], sizes = [8, 32], strides = [1, 1]} : vector<8x128xf32> to vector<8x32xf32>
    %166 = vector.extract_strided_slice %162 {offsets = [0, 96], sizes = [8, 32], strides = [1, 1]} : vector<8x128xf32> to vector<8x32xf32>
    %167 = arith.mulf %164, %155 : vector<8x32xf32>
    %168 = arith.mulf %163, %165 : vector<8x32xf32>
    %169 = arith.addf %167, %168 : vector<8x32xf32>
    %170 = math.tanh %169 : vector<8x32xf32>
    %171 = arith.mulf %166, %170 : vector<8x32xf32>
    %cst_47 = arith.constant dense<0.000000e+00> : vector<8x128xf32>
    %172 = tpu.matmul %171, %153, %cst_47 {dimension_numbers = #tpu.dot_dimension_numbers<[1], [0], [0], [1], [0, 0, 1, 1], [], []>} : vector<8x32xf32>, vector<32x128xf32>, vector<8x128xf32> -> vector<8x128xf32>
    %173 = arith.addf %150, %172 : vector<8x128xf32>
    %174 = math.tanh %173 : vector<8x128xf32>
    %cst_48 = arith.constant 5.000000e-01 : f32
    %175 = vector.broadcast %cst_48 : f32 to vector<8x128xf32>
    %176 = arith.mulf %175, %174 : vector<8x128xf32>
    %cst_49 = arith.constant 5.000000e-01 : f32
    %177 = vector.broadcast %cst_49 : f32 to vector<8x128xf32>
    %178 = arith.addf %176, %177 : vector<8x128xf32>
    %179 = vector.extract_strided_slice %178 {offsets = [0, 0], sizes = [8, 32], strides = [1, 1]} : vector<8x128xf32> to vector<8x32xf32>
    %180 = vector.extract_strided_slice %178 {offsets = [0, 32], sizes = [8, 32], strides = [1, 1]} : vector<8x128xf32> to vector<8x32xf32>
    %181 = vector.extract_strided_slice %174 {offsets = [0, 64], sizes = [8, 32], strides = [1, 1]} : vector<8x128xf32> to vector<8x32xf32>
    %182 = vector.extract_strided_slice %178 {offsets = [0, 96], sizes = [8, 32], strides = [1, 1]} : vector<8x128xf32> to vector<8x32xf32>
    %183 = arith.mulf %180, %169 : vector<8x32xf32>
    %184 = arith.mulf %179, %181 : vector<8x32xf32>
    %185 = arith.addf %183, %184 : vector<8x32xf32>
    %186 = math.tanh %185 : vector<8x32xf32>
    %187 = arith.mulf %182, %186 : vector<8x32xf32>
    %cst_50 = arith.constant dense<0.000000e+00> : vector<8x128xf32>
    %188 = tpu.matmul %187, %153, %cst_50 {dimension_numbers = #tpu.dot_dimension_numbers<[1], [0], [0], [1], [0, 0, 1, 1], [], []>} : vector<8x32xf32>, vector<32x128xf32>, vector<8x128xf32> -> vector<8x128xf32>
    %189 = arith.addf %150, %188 : vector<8x128xf32>
    %190 = math.tanh %189 : vector<8x128xf32>
    %cst_51 = arith.constant 5.000000e-01 : f32
    %191 = vector.broadcast %cst_51 : f32 to vector<8x128xf32>
    %192 = arith.mulf %191, %190 : vector<8x128xf32>
    %cst_52 = arith.constant 5.000000e-01 : f32
    %193 = vector.broadcast %cst_52 : f32 to vector<8x128xf32>
    %194 = arith.addf %192, %193 : vector<8x128xf32>
    %195 = vector.extract_strided_slice %194 {offsets = [0, 0], sizes = [8, 32], strides = [1, 1]} : vector<8x128xf32> to vector<8x32xf32>
    %196 = vector.extract_strided_slice %194 {offsets = [0, 32], sizes = [8, 32], strides = [1, 1]} : vector<8x128xf32> to vector<8x32xf32>
    %197 = vector.extract_strided_slice %190 {offsets = [0, 64], sizes = [8, 32], strides = [1, 1]} : vector<8x128xf32> to vector<8x32xf32>
    %198 = vector.extract_strided_slice %194 {offsets = [0, 96], sizes = [8, 32], strides = [1, 1]} : vector<8x128xf32> to vector<8x32xf32>
    %199 = arith.mulf %196, %185 : vector<8x32xf32>
    %200 = arith.mulf %195, %197 : vector<8x32xf32>
    %201 = arith.addf %199, %200 : vector<8x32xf32>
    %202 = math.tanh %201 : vector<8x32xf32>
    %203 = arith.mulf %198, %202 : vector<8x32xf32>
    %cst_53 = arith.constant dense<0.000000e+00> : vector<8x128xf32>
    %204 = tpu.matmul %203, %153, %cst_53 {dimension_numbers = #tpu.dot_dimension_numbers<[1], [0], [0], [1], [0, 0, 1, 1], [], []>} : vector<8x32xf32>, vector<32x128xf32>, vector<8x128xf32> -> vector<8x128xf32>
    %205 = arith.addf %150, %204 : vector<8x128xf32>
    %206 = math.tanh %205 : vector<8x128xf32>
    %cst_54 = arith.constant 5.000000e-01 : f32
    %207 = vector.broadcast %cst_54 : f32 to vector<8x128xf32>
    %208 = arith.mulf %207, %206 : vector<8x128xf32>
    %cst_55 = arith.constant 5.000000e-01 : f32
    %209 = vector.broadcast %cst_55 : f32 to vector<8x128xf32>
    %210 = arith.addf %208, %209 : vector<8x128xf32>
    %211 = vector.extract_strided_slice %210 {offsets = [0, 0], sizes = [8, 32], strides = [1, 1]} : vector<8x128xf32> to vector<8x32xf32>
    %212 = vector.extract_strided_slice %210 {offsets = [0, 32], sizes = [8, 32], strides = [1, 1]} : vector<8x128xf32> to vector<8x32xf32>
    %213 = vector.extract_strided_slice %206 {offsets = [0, 64], sizes = [8, 32], strides = [1, 1]} : vector<8x128xf32> to vector<8x32xf32>
    %214 = vector.extract_strided_slice %210 {offsets = [0, 96], sizes = [8, 32], strides = [1, 1]} : vector<8x128xf32> to vector<8x32xf32>
    %215 = arith.mulf %212, %201 : vector<8x32xf32>
    %216 = arith.mulf %211, %213 : vector<8x32xf32>
    %217 = arith.addf %215, %216 : vector<8x32xf32>
    %218 = math.tanh %217 : vector<8x32xf32>
    %219 = arith.mulf %214, %218 : vector<8x32xf32>
    %cst_56 = arith.constant dense<0.000000e+00> : vector<8x128xf32>
    %220 = tpu.matmul %219, %153, %cst_56 {dimension_numbers = #tpu.dot_dimension_numbers<[1], [0], [0], [1], [0, 0, 1, 1], [], []>} : vector<8x32xf32>, vector<32x128xf32>, vector<8x128xf32> -> vector<8x128xf32>
    %221 = arith.addf %150, %220 : vector<8x128xf32>
    %222 = math.tanh %221 : vector<8x128xf32>
    %cst_57 = arith.constant 5.000000e-01 : f32
    %223 = vector.broadcast %cst_57 : f32 to vector<8x128xf32>
    %224 = arith.mulf %223, %222 : vector<8x128xf32>
    %cst_58 = arith.constant 5.000000e-01 : f32
    %225 = vector.broadcast %cst_58 : f32 to vector<8x128xf32>
    %226 = arith.addf %224, %225 : vector<8x128xf32>
    %227 = vector.extract_strided_slice %226 {offsets = [0, 0], sizes = [8, 32], strides = [1, 1]} : vector<8x128xf32> to vector<8x32xf32>
    %228 = vector.extract_strided_slice %226 {offsets = [0, 32], sizes = [8, 32], strides = [1, 1]} : vector<8x128xf32> to vector<8x32xf32>
    %229 = vector.extract_strided_slice %222 {offsets = [0, 64], sizes = [8, 32], strides = [1, 1]} : vector<8x128xf32> to vector<8x32xf32>
    %230 = vector.extract_strided_slice %226 {offsets = [0, 96], sizes = [8, 32], strides = [1, 1]} : vector<8x128xf32> to vector<8x32xf32>
    %231 = arith.mulf %228, %217 : vector<8x32xf32>
    %232 = arith.mulf %227, %229 : vector<8x32xf32>
    %233 = arith.addf %231, %232 : vector<8x32xf32>
    %234 = math.tanh %233 : vector<8x32xf32>
    %235 = arith.mulf %230, %234 : vector<8x32xf32>
    %cst_59 = arith.constant dense<0.000000e+00> : vector<8x128xf32>
    %236 = tpu.matmul %235, %153, %cst_59 {dimension_numbers = #tpu.dot_dimension_numbers<[1], [0], [0], [1], [0, 0, 1, 1], [], []>} : vector<8x32xf32>, vector<32x128xf32>, vector<8x128xf32> -> vector<8x128xf32>
    %237 = arith.addf %150, %236 : vector<8x128xf32>
    %238 = math.tanh %237 : vector<8x128xf32>
    %cst_60 = arith.constant 5.000000e-01 : f32
    %239 = vector.broadcast %cst_60 : f32 to vector<8x128xf32>
    %240 = arith.mulf %239, %238 : vector<8x128xf32>
    %cst_61 = arith.constant 5.000000e-01 : f32
    %241 = vector.broadcast %cst_61 : f32 to vector<8x128xf32>
    %242 = arith.addf %240, %241 : vector<8x128xf32>
    %243 = vector.extract_strided_slice %242 {offsets = [0, 0], sizes = [8, 32], strides = [1, 1]} : vector<8x128xf32> to vector<8x32xf32>
    %244 = vector.extract_strided_slice %242 {offsets = [0, 32], sizes = [8, 32], strides = [1, 1]} : vector<8x128xf32> to vector<8x32xf32>
    %245 = vector.extract_strided_slice %238 {offsets = [0, 64], sizes = [8, 32], strides = [1, 1]} : vector<8x128xf32> to vector<8x32xf32>
    %246 = vector.extract_strided_slice %242 {offsets = [0, 96], sizes = [8, 32], strides = [1, 1]} : vector<8x128xf32> to vector<8x32xf32>
    %247 = arith.mulf %244, %233 : vector<8x32xf32>
    %248 = arith.mulf %243, %245 : vector<8x32xf32>
    %249 = arith.addf %247, %248 : vector<8x32xf32>
    %250 = math.tanh %249 : vector<8x32xf32>
    %251 = arith.mulf %246, %250 : vector<8x32xf32>
    %cst_62 = arith.constant dense<0.000000e+00> : vector<8x128xf32>
    %252 = tpu.matmul %251, %153, %cst_62 {dimension_numbers = #tpu.dot_dimension_numbers<[1], [0], [0], [1], [0, 0, 1, 1], [], []>} : vector<8x32xf32>, vector<32x128xf32>, vector<8x128xf32> -> vector<8x128xf32>
    %253 = arith.addf %150, %252 : vector<8x128xf32>
    %254 = math.tanh %253 : vector<8x128xf32>
    %cst_63 = arith.constant 5.000000e-01 : f32
    %255 = vector.broadcast %cst_63 : f32 to vector<8x128xf32>
    %256 = arith.mulf %255, %254 : vector<8x128xf32>
    %cst_64 = arith.constant 5.000000e-01 : f32
    %257 = vector.broadcast %cst_64 : f32 to vector<8x128xf32>
    %258 = arith.addf %256, %257 : vector<8x128xf32>
    %259 = vector.extract_strided_slice %258 {offsets = [0, 0], sizes = [8, 32], strides = [1, 1]} : vector<8x128xf32> to vector<8x32xf32>
    %260 = vector.extract_strided_slice %258 {offsets = [0, 32], sizes = [8, 32], strides = [1, 1]} : vector<8x128xf32> to vector<8x32xf32>
    %261 = vector.extract_strided_slice %254 {offsets = [0, 64], sizes = [8, 32], strides = [1, 1]} : vector<8x128xf32> to vector<8x32xf32>
    %262 = vector.extract_strided_slice %258 {offsets = [0, 96], sizes = [8, 32], strides = [1, 1]} : vector<8x128xf32> to vector<8x32xf32>
    %263 = arith.mulf %260, %249 : vector<8x32xf32>
    %264 = arith.mulf %259, %261 : vector<8x32xf32>
    %265 = arith.addf %263, %264 : vector<8x32xf32>
    %266 = math.tanh %265 : vector<8x32xf32>
    %267 = arith.mulf %262, %266 : vector<8x32xf32>
    %cst_65 = arith.constant dense<0.000000e+00> : vector<8x128xf32>
    %268 = tpu.matmul %267, %153, %cst_65 {dimension_numbers = #tpu.dot_dimension_numbers<[1], [0], [0], [1], [0, 0, 1, 1], [], []>} : vector<8x32xf32>, vector<32x128xf32>, vector<8x128xf32> -> vector<8x128xf32>
    %269 = arith.addf %150, %268 : vector<8x128xf32>
    %270 = math.tanh %269 : vector<8x128xf32>
    %cst_66 = arith.constant 5.000000e-01 : f32
    %271 = vector.broadcast %cst_66 : f32 to vector<8x128xf32>
    %272 = arith.mulf %271, %270 : vector<8x128xf32>
    %cst_67 = arith.constant 5.000000e-01 : f32
    %273 = vector.broadcast %cst_67 : f32 to vector<8x128xf32>
    %274 = arith.addf %272, %273 : vector<8x128xf32>
    %275 = vector.extract_strided_slice %274 {offsets = [0, 0], sizes = [8, 32], strides = [1, 1]} : vector<8x128xf32> to vector<8x32xf32>
    %276 = vector.extract_strided_slice %274 {offsets = [0, 32], sizes = [8, 32], strides = [1, 1]} : vector<8x128xf32> to vector<8x32xf32>
    %277 = vector.extract_strided_slice %270 {offsets = [0, 64], sizes = [8, 32], strides = [1, 1]} : vector<8x128xf32> to vector<8x32xf32>
    %278 = vector.extract_strided_slice %274 {offsets = [0, 96], sizes = [8, 32], strides = [1, 1]} : vector<8x128xf32> to vector<8x32xf32>
    %279 = arith.mulf %276, %265 : vector<8x32xf32>
    %280 = arith.mulf %275, %277 : vector<8x32xf32>
    %281 = arith.addf %279, %280 : vector<8x32xf32>
    %282 = math.tanh %281 : vector<8x32xf32>
    %283 = arith.mulf %278, %282 : vector<8x32xf32>
    %284 = tpu.concatenate %171, %187, %203, %219, %235, %251, %267, %283 in 0 : vector<8x32xf32>, vector<8x32xf32>, vector<8x32xf32>, vector<8x32xf32>, vector<8x32xf32>, vector<8x32xf32>, vector<8x32xf32>, vector<8x32xf32> -> vector<64x32xf32>
    %c0_68 = arith.constant 0 : index
    %c0_69 = arith.constant 0 : index
    %285 = vector.load %arg7[%c0_68, %c0_69] : memref<32x4xf32, #tpu.memory_space<vmem>>, vector<32x4xf32>
    %cst_70 = arith.constant dense<0.000000e+00> : vector<64x4xf32>
    %286 = tpu.matmul %284, %285, %cst_70 {dimension_numbers = #tpu.dot_dimension_numbers<[1], [0], [0], [1], [0, 0, 1, 1], [], []>} : vector<64x32xf32>, vector<32x4xf32>, vector<64x4xf32> -> vector<64x4xf32>
    %c0_71 = arith.constant 0 : index
    %c0_72 = arith.constant 0 : index
    %287 = vector.load %arg8[%c0_71, %c0_72] : memref<1x4xf32, #tpu.memory_space<vmem>>, vector<1x4xf32>
    %288 = vector.broadcast %287 : vector<1x4xf32> to vector<64x4xf32>
    %289 = arith.addf %286, %288 : vector<64x4xf32>
    %c0_73 = arith.constant 0 : index
    %c0_74 = arith.constant 0 : index
    %290 = vector.load %arg9[%c0_73, %c0_74] : memref<64x4xf32, #tpu.memory_space<vmem>>, vector<64x4xf32>
    tpu.vector_store %arg9[%c0_73, %c0_74], %289 {strides = array<i32>} : memref<64x4xf32, #tpu.memory_space<vmem>>, vector<64x4xf32>,
    return
  }
}

</mosaic_0001>

<bundles_post_ra>
// kernel: tpu_custom_call.1
= control target key start
LH: loop header
LB: loop body
LE: loop exit
PB: predicated region body
PF: predicated region fallthrough
CT: control target
= control target key end

     0   :  { %16 = vsyncpa [#allocation3], 0  ;;  %s2957_s0 = inlined_call_operand.vmem [shape: f32[64,4], index: 0, kind: input, shape index: {}]   ;;  %s2958_s1 = inlined_call_operand.vmem [shape: f32[4,128], index: 1, kind: input, shape index: {}]   ;;  %s2959_s2 = inlined_call_operand.vmem [shape: f32[32,128], index: 2, kind: input, shape index: {}]   ;;  %s2960_s3 = inlined_call_operand.vmem [shape: f32[1,128], index: 3, kind: input, shape index: {}]   ;;  %s2961_s4 = inlined_call_operand.vmem [shape: f32[32,144], index: 4, kind: input, shape index: {}]   ;;  %s2962_s5 = inlined_call_operand.vmem [shape: f32[1,144], index: 5, kind: input, shape index: {}]   ;;  %s2963_s6 = inlined_call_operand.hbm [shape: f32[32,128], index: 6, kind: input, shape index: {}]   ;;  %s2964_s7 = inlined_call_operand.vmem [shape: f32[32,4], index: 7, kind: input, shape index: {}]   ;;  %s2965_s8 = inlined_call_operand.vmem [shape: f32[1,4], index: 8, kind: input, shape index: {}]   ;;  %s2966_s9 = inlined_call_operand.vmem [shape: f32[64,4], index: 9, kind: output, shape index: {0}]   ;;  %s2967_s10 = inlined_call_operand.hbm [shape: f32[8,16], index: 10, kind: output, shape index: {1}]  }
   0x1   :  { %17 = vsyncpa [#allocation4], 0  ;;  %s2444_s13 = smov [#allocation2]  }
   0x2   :  { %s35_s14 = sshll.u32 %s2444_s13, 4  ;;  %s36_s14 = int_to_ptr.vmem [resolvable:$true] %s35_s14 }
   0x3   :  { %s2408_s15 = scalar_lea.vmem %s36_s14, 512  ;;  %p2413_p1 = scmp.lt.s32.totalorder %s36_s14, %s36_s14 }
   0x4   :  { %p2409_p0 = scmp.ne.s32.totalorder %s36_s14, %s2408_s15  ;;  %p2414_p2 = scmp.lt.s32.totalorder %s2408_s15, %s2408_s15 }
   0x6   :  { %p2415_p3 = por %p2414_p2, %p2413_p1 }
   0x8   :  { %p2416_p4 = pnand %p2415_p3, %p2409_p0 }
   0xa   :  { %2419 = shalt.err (!%p2416_p4)
}
   0xb   :  { %s2445_s16 = smov 128   ;;  %s2446_s17 = smov 8  }
   0xc   :  { %41 = dma.hbm_to_vmem [thread:$0]  %s2963_s6, 512, %s36_s14, [#allocation3], %s2445_s16, %s2445_s16, %s2446_s17  }
   0xd   :  { %2440 = dma.done.wait [#allocation3], 512  }
   0xe   :  { %2441 = vsyncadd [#allocation3], 4294966784  ;;  %v2447_v0 = vmov 0.0   ;;  %vm2448_vm0 = vmmov 0   ;;  %vm90_vm1 = vcmask 1043456   ;;  %vm65_vm2 = vcmask 31744  }
   0xf   :  { %2143 = vmatprep.subr.mxu1 %v2447_v0  ;;  %2151 = vmatprep.mubr.msk.f32.mxu1 %vm2448_vm0, %v2447_v0  ;;  %v57_v1 = vld [vmem:[%s2958_s1] sm:$0xf]  ;;  %v50_v3 = vld [vmem:[%s2957_s0 + $0x8] sm:$0xff]  ;;  %v2526_v4 = vld [vmem:[%s2959_s2 + $0x18] sm:$0xff]  ;;  %s2450_s6 = smov 32   ;;  %vm203_vm3 = vcmask 261120  }
  0x10   :  { %v49_v2 = vld [vmem:[%s2957_s0] sm:$0xff]  ;;  %2118 = vmatprep.subr.msk.mxu0 %vm90_vm1, %v57_v1  ;;  %v51_v5 = vld [vmem:[%s2957_s0 + $0x10] sm:$0xff]  ;;  %2144 = vmatpush3.msra.mxu1 %v2526_v4  ;;  %v52_v7 = vld [vmem:[%s2957_s0 + $0x18] sm:$0xff]  ;;  %vm1066_vm4 = vcmask 130048   ;;  %s2451_s16 = smov [#allocation5]  }
  0x11   :  { %2120 = vmatprep.mubr.msk.f32.mxu0 %vm65_vm2, %v49_v2  ;;  %2119 = vmatpush3.msk.msra.mxu0 %vm90_vm1, %v57_v1  ;;  %v2537_v6 = vld [vmem:[%s2959_s2 + $0x10] sm:$0xff]  ;;  %v53_v8 = vld [vmem:[%s2957_s0 + $0x20] sm:$0xff]  ;;  %v2551_v9 = vld [vmem:[%s2959_s2 + $0x8] sm:$0xff]  ;;  %s1972_s17 = sshll.u32 %s2451_s16, 4  ;;  %s1973_s17 = int_to_ptr.vmem [resolvable:$true] %s1972_s17 }
  0x12   :  { %2121 = vmatmul.mubr.msk.f32.vlgmr.msra.gmra.mxu0 %vm65_vm2, %v50_v3  ;;  %2132 = vmatprep.subr.mxu0 %v2447_v0  ;;  %v2561_v10 = vld [vmem:[%s2959_s2] sm:$0xff]  ;;  %v54_v11 = vld [vmem:[%s2957_s0 + $0x28] sm:$0xff]  ;;  %v55_v12 = vld [vmem:[%s2957_s0 + $0x30] sm:$0xff]  ;;  %s2420_s18 = scalar_lea.vmem %s1973_s17, 128  ;;  %p2425_p6 = scmp.lt.s32.totalorder %s1973_s17, %s1973_s17 }
  0x13   :  { %2133 = vmatpush3.msra.mxu0 %v2526_v4  ;;  %2123 = vmatprep.mubr.msk.f32.mxu0 %vm65_vm2, %v51_v5  ;;  %v56_v13 = vld [vmem:[%s2957_s0 + $0x38] sm:$0xff]  ;;  %v1983_v14 = vld [vmem:[%s2960_s3] ss:$0 sm:$0xff]  ;;  %s2449_s3 = smov 64   ;;  %p2421_p5 = scmp.ne.s32.totalorder %s1973_s17, %s2420_s18 }
  0x14   :  { %2134 = vmatprep.subr.mxu0 %v2447_v0  ;;  %2145 = vmatprep.subr.mxu1 %v2447_v0  ;;  %p2426_p7 = scmp.lt.s32.totalorder %s2420_s18, %s2420_s18 }
  0x15   :  { %2135 = vmatpush3.msra.mxu0 %v2537_v6  ;;  %2146 = vmatpush3.msra.mxu1 %v2537_v6 }
  0x16   :  { %2124 = vmatmul.mubr.msk.f32.gmra.mxu0 %vm65_vm2, %v52_v7  ;;  %2136 = vmatprep.subr.mxu0 %v2447_v0  ;;  %p2427_p8 = por %p2426_p7, %p2425_p6 }
  0x17   :  { %2126 = vmatprep.mubr.msk.f32.mxu0 %vm65_vm2, %v53_v8  ;;  %2137 = vmatpush3.msra.mxu0 %v2551_v9 }
  0x18   :  { %2138 = vmatprep.subr.mxu0 %v2447_v0  ;;  %2147 = vmatprep.subr.mxu1 %v2447_v0  ;;  %p2428_p9 = pnand %p2427_p8, %p2421_p5 }
  0x19   :  { %2139 = vmatpush3.msra.mxu0 %v2561_v10  ;;  %2148 = vmatpush3.msra.mxu1 %v2551_v9 }
  0x1a   :  { %2127 = vmatmul.mubr.msk.f32.gmra.mxu0 %vm65_vm2, %v54_v11  ;;  %2149 = vmatprep.subr.mxu1 %v2447_v0 }
  0x1b   :  { %2129 = vmatprep.mubr.msk.f32.mxu0 %vm65_vm2, %v55_v12  ;;  %2150 = vmatpush3.msra.mxu1 %v2561_v10 }
  0x1c   :  { %2154 = vmatprep.subr.mxu0 %v2447_v0  ;;  %2165 = vmatprep.subr.mxu1 %v2447_v0 }
  0x1e   :  { %2130 = vmatmul.mubr.msk.f32.gmra.mxu0 %vm65_vm2, %v56_v13 }
  0x1f   :  { %2140 = vmatprep.mubr.msk.f32.mxu0 %vm2448_vm0, %v2447_v0 }
  0x22   :  { %2141 = vmatmul.mubr.f32.vlgmr.msra.gmra.mxu0 %v2447_v0 }
  0x23   :  { %2155 = vmatpush3.msra.mxu0 %v2526_v4  ;;  %2162 = vmatprep.mubr.msk.f32.mxu0 %vm2448_vm0, %v2447_v0 }
  0x24   :  { %2156 = vmatprep.subr.mxu0 %v2447_v0 }
  0x25   :  { %2157 = vmatpush3.msra.mxu0 %v2537_v6 }
  0x26   :  { %2158 = vmatprep.subr.mxu0 %v2447_v0 }
  0x27   :  { %2159 = vmatpush3.msra.mxu0 %v2551_v9 }
  0x28   :  { %2160 = vmatprep.subr.mxu0 %v2447_v0 }
  0x29   :  { %2161 = vmatpush3.msra.mxu0 %v2561_v10 }
  0x2a   :  { %2176 = vmatprep.subr.mxu0 %v2447_v0 }
  0xd2   :  { %v2122_v15 = vpop.f32.mrf.mxu0 }
  0xd3   :  { %v166_v16 = vadd.f32 %v2122_v15, %v1983_v14 }
  0xd4   :  { %v160_v17 = vpop.f32.mrf.mxu0 }
  0xd5   :  { %v161_v29 = vadd.f32 %v1983_v14, %v160_v17 }
  0xd6   :  { %v2125_v18 = vpop.f32.mrf.mxu0 }
  0xd7   :  { %v2601_v19 = vadd.f32 %v2125_v18, %v1983_v14 }
  0xd8   :  { %v170_v20 = vpop.f32.mrf.mxu0 }
  0xd9   :  { %v2603_v21 = vadd.f32 %v1983_v14, %v170_v20 }
  0xda   :  { %v2128_v22 = vpop.f32.mrf.mxu0 }
  0xdb   :  { %v2605_v23 = vadd.f32 %v2128_v22, %v1983_v14 }
  0xdc   :  { %v180_v24 = vpop.f32.mrf.mxu0 }
  0xdd   :  { %v2607_v25 = vadd.f32 %v1983_v14, %v180_v24 }
  0xde   :  { %v2131_v26 = vpop.f32.mrf.mxu0 }
  0xdf   :  { %v2609_v27 = vadd.f32 %v2131_v26, %v1983_v14 }
  0xe0   :  { %v190_v28 = vpop.f32.mrf.mxu0 }
  0xe1   :  { %v2611_v30 = vadd.f32 %v1983_v14, %v190_v28 }
  0xe2   :  { %v273_v31 = vpop.f32.mrf.mxu0 }
  0xe3   :  { %v277_v32 = vadd.f32 %v273_v31, %v161_v29 }
  0xe4   :  { %v2142_v33 = vpop.f32.mrf.mxu0 }
  0xe5   :  { %2336 = vtanh.f32 %v277_v32 }
  0xf2   :  { %v2337_v34 = vpop.eup %2336 }
  0xf3   :  { %283 = vrot.lane.b32.xlu0 %v2337_v34, %s2449_s3  ;;  %v279_v35 = vmul.f32 0.5, %v2337_v34 }
  0xf5   :  { %v280_v36 = vadd.f32 0.5, %v279_v35 }
  0xf7   :  { %v281_v39 = vmul.f32 0.0, %v280_v36 }
 0x165   :  { %v284_v37 = vpop.permute.xlu0 %283 }
 0x166   :  { %v286_v38 = vmul.f32 %v284_v37, %v280_v36 }
 0x168   :  { %288 = vrot.lane.b32.xlu0 %v286_v38, %s2450_s6 }
 0x1da   :  { %v289_v40 = vpop.permute.xlu0 %288 }
 0x1db   :  { %v291_v41 = vadd.f32 %v289_v40, %v281_v39 }
 0x1dd   :  { %2338 = vtanh.f32 %v291_v41 }
 0x1ea   :  { %v2339_v42 = vpop.eup %2338 }
 0x1eb   :  { %294 = vrot.lane.b32.xlu1 %v2339_v42, %s2449_s3 }
 0x25d   :  { %v295_v43 = vpop.permute.xlu1 %294 }
 0x25e   :  { %v297_v44 = vmul.f32 %v295_v43, %v280_v36 }
 0x260   :  { %299 = vrot.lane.b32.xlu1 %v297_v44, %s2450_s6 }
 0x2d2   :  { %v300_v45 = vpop.permute.xlu1 %299 }
 0x2d3   :  { %2152 = vmatmul.mubr.msk.f32.vlgmr.msra.gmra.mxu1 %vm203_vm3, %v300_v45 }
 0x2d4   :  { %2166 = vmatpush3.msra.mxu1 %v2526_v4  ;;  %2173 = vmatprep.mubr.msk.f32.mxu1 %vm2448_vm0, %v2447_v0 }
 0x2d5   :  { %2167 = vmatprep.subr.mxu1 %v2447_v0 }
 0x2d6   :  { %2168 = vmatpush3.msra.mxu1 %v2537_v6 }
 0x2d7   :  { %2169 = vmatprep.subr.mxu1 %v2447_v0 }
 0x2d8   :  { %2170 = vmatpush3.msra.mxu1 %v2551_v9 }
 0x2d9   :  { %2171 = vmatprep.subr.mxu1 %v2447_v0 }
 0x2da   :  { %2172 = vmatpush3.msra.mxu1 %v2561_v10 }
 0x2db   :  { %2187 = vmatprep.subr.mxu1 %v2447_v0 }
 0x393   :  { %v369_v46 = vpop.f32.mrf.mxu1 }
 0x394   :  { %v373_v47 = vadd.f32 %v369_v46, %v166_v16 }
 0x395   :  { %v2153_v48 = vpop.f32.mrf.mxu1 }
 0x396   :  { %2340 = vtanh.f32 %v373_v47 }
 0x3a3   :  { %v2341_v49 = vpop.eup %2340 }
 0x3a4   :  { %379 = vrot.lane.b32.xlu0 %v2341_v49, %s2449_s3  ;;  %v375_v50 = vmul.f32 0.5, %v2341_v49 }
 0x3a6   :  { %v376_v51 = vadd.f32 0.5, %v375_v50 }
 0x3a8   :  { %v377_v54 = vmul.f32 %v376_v51, %v291_v41 }
 0x416   :  { %v380_v52 = vpop.permute.xlu0 %379 }
 0x417   :  { %v382_v53 = vmul.f32 %v380_v52, %v376_v51 }
 0x419   :  { %384 = vrot.lane.b32.xlu1 %v382_v53, %s2450_s6 }
 0x48b   :  { %v385_v55 = vpop.permute.xlu1 %384 }
 0x48c   :  { %v387_v56 = vadd.f32 %v385_v55, %v377_v54 }
 0x48e   :  { %2342 = vtanh.f32 %v387_v56 }
 0x49b   :  { %v2343_v57 = vpop.eup %2342 }
 0x49c   :  { %390 = vrot.lane.b32.xlu0 %v2343_v57, %s2449_s3 }
 0x50e   :  { %v391_v58 = vpop.permute.xlu0 %390 }
 0x50f   :  { %v393_v59 = vmul.f32 %v391_v58, %v376_v51 }
 0x511   :  { %395 = vrot.lane.b32.xlu1 %v393_v59, %s2450_s6 }
 0x583   :  { %v396_v60 = vpop.permute.xlu1 %395 }
 0x584   :  { %2163 = vmatmul.mubr.msk.f32.vlgmr.msra.gmra.mxu0 %vm203_vm3, %v396_v60 }
 0x585   :  { %2177 = vmatpush3.msra.mxu0 %v2526_v4  ;;  %2184 = vmatprep.mubr.msk.f32.mxu0 %vm2448_vm0, %v2447_v0 }
 0x586   :  { %2178 = vmatprep.subr.mxu0 %v2447_v0 }
 0x587   :  { %2179 = vmatpush3.msra.mxu0 %v2537_v6 }
 0x588   :  { %2180 = vmatprep.subr.mxu0 %v2447_v0 }
 0x589   :  { %2181 = vmatpush3.msra.mxu0 %v2551_v9 }
 0x58a   :  { %2182 = vmatprep.subr.mxu0 %v2447_v0 }
 0x58b   :  { %2183 = vmatpush3.msra.mxu0 %v2561_v10 }
 0x58c   :  { %2198 = vmatprep.subr.mxu0 %v2447_v0 }
 0x644   :  { %v465_v61 = vpop.f32.mrf.mxu0 }
 0x645   :  { %v469_v62 = vadd.f32 %v465_v61, %v2603_v21 }
 0x646   :  { %v2164_v63 = vpop.f32.mrf.mxu0 }
 0x647   :  { %2344 = vtanh.f32 %v469_v62 }
 0x654   :  { %v2345_v1 = vpop.eup %2344 }
 0x655   :  { %475 = vrot.lane.b32.xlu0 %v2345_v1, %s2449_s3  ;;  %v471_v2 = vmul.f32 0.5, %v2345_v1 }
 0x657   :  { %v472_v3 = vadd.f32 0.5, %v471_v2 }
 0x659   :  { %v473_v8 = vmul.f32 %v472_v3, %v387_v56 }
 0x6c7   :  { %v476_v5 = vpop.permute.xlu0 %475 }
 0x6c8   :  { %v478_v7 = vmul.f32 %v476_v5, %v472_v3 }
 0x6ca   :  { %480 = vrot.lane.b32.xlu1 %v478_v7, %s2450_s6 }
 0x73c   :  { %v481_v11 = vpop.permute.xlu1 %480 }
 0x73d   :  { %v483_v12 = vadd.f32 %v481_v11, %v473_v8 }
 0x73f   :  { %2346 = vtanh.f32 %v483_v12 }
 0x74c   :  { %v2347_v13 = vpop.eup %2346 }
 0x74d   :  { %486 = vrot.lane.b32.xlu0 %v2347_v13, %s2449_s3 }
 0x7bf   :  { %v487_v14 = vpop.permute.xlu0 %486 }
 0x7c0   :  { %v489_v15 = vmul.f32 %v487_v14, %v472_v3 }
 0x7c2   :  { %491 = vrot.lane.b32.xlu1 %v489_v15, %s2450_s6 }
 0x834   :  { %v492_v16 = vpop.permute.xlu1 %491 }
 0x835   :  { %2174 = vmatmul.mubr.msk.f32.vlgmr.msra.gmra.mxu1 %vm203_vm3, %v492_v16 }
 0x836   :  { %2188 = vmatpush3.msra.mxu1 %v2526_v4  ;;  %2195 = vmatprep.mubr.msk.f32.mxu1 %vm2448_vm0, %v2447_v0 }
 0x837   :  { %2189 = vmatprep.subr.mxu1 %v2447_v0 }
 0x838   :  { %2190 = vmatpush3.msra.mxu1 %v2537_v6 }
 0x839   :  { %2191 = vmatprep.subr.mxu1 %v2447_v0 }
 0x83a   :  { %2192 = vmatpush3.msra.mxu1 %v2551_v9 }
 0x83b   :  { %2193 = vmatprep.subr.mxu1 %v2447_v0 }
 0x83c   :  { %2194 = vmatpush3.msra.mxu1 %v2561_v10 }
 0x83d   :  { %2209 = vmatprep.subr.mxu1 %v2447_v0 }
 0x8f5   :  { %v561_v17 = vpop.f32.mrf.mxu1 }
 0x8f6   :  { %v565_v18 = vadd.f32 %v561_v17, %v2601_v19 }
 0x8f7   :  { %v2175_v20 = vpop.f32.mrf.mxu1 }
 0x8f8   :  { %2348 = vtanh.f32 %v565_v18 }
 0x905   :  { %v2349_v21 = vpop.eup %2348 }
 0x906   :  { %571 = vrot.lane.b32.xlu0 %v2349_v21, %s2449_s3  ;;  %v567_v22 = vmul.f32 0.5, %v2349_v21 }
 0x908   :  { %v568_v24 = vadd.f32 0.5, %v567_v22 }
 0x90a   :  { %v569_v29 = vmul.f32 %v568_v24, %v483_v12 }
 0x978   :  { %v572_v26 = vpop.permute.xlu0 %571 }
 0x979   :  { %v574_v28 = vmul.f32 %v572_v26, %v568_v24 }
 0x97b   :  { %576 = vrot.lane.b32.xlu1 %v574_v28, %s2450_s6 }
 0x9ed   :  { %v577_v31 = vpop.permute.xlu1 %576 }
 0x9ee   :  { %v579_v32 = vadd.f32 %v577_v31, %v569_v29  ;;  %v977_v31 = vld [vmem:[%s2961_s4 + $0x38] sm:$0xff] }
 0x9f0   :  { %2350 = vtanh.f32 %v579_v32 }
 0x9fd   :  { %v2351_v33 = vpop.eup %2350 }
 0x9fe   :  { %582 = vrot.lane.b32.xlu0 %v2351_v33, %s2449_s3  ;;  %v2717_v33 = vld [vmem:[#allocation2 + $0x18] sm:$0xff] }
 0xa70   :  { %v583_v34 = vpop.permute.xlu0 %582 }
 0xa71   :  { %v585_v19 = vmul.f32 %v583_v34, %v568_v24  ;;  %v974_v34 = vld [vmem:[%s2961_s4 + $0x20] sm:$0xff] }
 0xa73   :  { %587 = vrot.lane.b32.xlu1 %v585_v19, %s2450_s6  ;;  %v973_v19 = vld [vmem:[%s2961_s4 + $0x18] sm:$0xff] }
 0xae5   :  { %v588_v35 = vpop.permute.xlu1 %587 }
 0xae6   :  { %2185 = vmatmul.mubr.msk.f32.vlgmr.msra.gmra.mxu0 %vm203_vm3, %v588_v35  ;;  %v2726_v35 = vld [vmem:[#allocation2 + $0x10] sm:$0xff] }
 0xae7   :  { %2199 = vmatpush3.msra.mxu0 %v2526_v4  ;;  %2206 = vmatprep.mubr.msk.f32.mxu0 %vm2448_vm0, %v2447_v0 }
 0xae8   :  { %2200 = vmatprep.subr.mxu0 %v2447_v0 }
 0xae9   :  { %2201 = vmatpush3.msra.mxu0 %v2537_v6 }
 0xaea   :  { %2202 = vmatprep.subr.mxu0 %v2447_v0 }
 0xaeb   :  { %2203 = vmatpush3.msra.mxu0 %v2551_v9 }
 0xaec   :  { %2204 = vmatprep.subr.mxu0 %v2447_v0 }
 0xaed   :  { %2205 = vmatpush3.msra.mxu0 %v2561_v10 }
 0xaee   :  { %1019 = vmatprep.subr.mxu0 %v977_v31 }
 0xba6   :  { %v657_v36 = vpop.f32.mrf.mxu0 }
 0xba7   :  { %v661_v37 = vadd.f32 %v657_v36, %v2607_v25  ;;  %v972_v36 = vld [vmem:[%s2961_s4 + $0x10] sm:$0xff] }
 0xba8   :  { %v2186_v38 = vpop.f32.mrf.mxu0 }
 0xba9   :  { %2352 = vtanh.f32 %v661_v37  ;;  %v2732_v37 = vld [vmem:[#allocation2 + $0x8] sm:$0xff] }
 0xbaa   :  { %v971_v38 = vld [vmem:[%s2961_s4 + $0x8] sm:$0xff] }
 0xbb6   :  { %v2353_v39 = vpop.eup %2352 }
 0xbb7   :  { %667 = vrot.lane.b32.xlu0 %v2353_v39, %s2449_s3  ;;  %v663_v40 = vmul.f32 0.5, %v2353_v39  ;;  %v970_v39 = vld [vmem:[%s2961_s4] sm:$0xff] }
 0xbb9   :  { %v664_v41 = vadd.f32 0.5, %v663_v40 }
 0xbbb   :  { %v665_v44 = vmul.f32 %v664_v41, %v579_v32  ;;  %v975_v32 = vld [vmem:[%s2961_s4 + $0x28] sm:$0xff] }
 0xc29   :  { %v668_v42 = vpop.permute.xlu0 %667 }
 0xc2a   :  { %v670_v43 = vmul.f32 %v668_v42, %v664_v41 }
 0xc2c   :  { %672 = vrot.lane.b32.xlu1 %v670_v43, %s2450_s6 }
 0xc9e   :  { %v673_v45 = vpop.permute.xlu1 %672 }
 0xc9f   :  { %v675_v46 = vadd.f32 %v673_v45, %v665_v44 }
 0xca1   :  { %2354 = vtanh.f32 %v675_v46 }
 0xcae   :  { %v2355_v47 = vpop.eup %2354 }
 0xcaf   :  { %678 = vrot.lane.b32.xlu0 %v2355_v47, %s2449_s3  ;;  %v980_v47 = vlaneseq }
 0xd21   :  { %v679_v48 = vpop.permute.xlu0 %678 }
 0xd22   :  { %v681_v25 = vmul.f32 %v679_v48, %v664_v41  ;;  %v2746_v41 = vld [vmem:[#allocation2] sm:$0xff]  ;;  %v981_v48 = vshrl.u32 %v980_v47, 7 }
 0xd24   :  { %683 = vrot.lane.b32.xlu1 %v681_v25, %s2450_s6  ;;  %v982_v25 = vsub.s32 0, %v981_v48 }
 0xd96   :  { %v684_v49 = vpop.permute.xlu1 %683 }
 0xd97   :  { %2196 = vmatmul.mubr.msk.f32.vlgmr.msra.gmra.mxu1 %vm203_vm3, %v684_v49  ;;  %v978_v49 = vld [vmem:[%s2962_s5] sm:$0x3] }
 0xd98   :  { %2210 = vmatpush3.msra.mxu1 %v2526_v4  ;;  %2217 = vmatprep.mubr.msk.f32.mxu1 %vm2448_vm0, %v2447_v0 }
 0xd99   :  { %2211 = vmatprep.subr.mxu1 %v2447_v0 }
 0xd9a   :  { %2212 = vmatpush3.msra.mxu1 %v2537_v6 }
 0xd9b   :  { %2213 = vmatprep.subr.mxu1 %v2447_v0 }
 0xd9c   :  { %2214 = vmatpush3.msra.mxu1 %v2551_v9 }
 0xd9d   :  { %2215 = vmatprep.subr.mxu1 %v2447_v0 }
 0xd9e   :  { %2216 = vmatpush3.msra.mxu1 %v2561_v10 }
 0xd9f   :  { %2220 = vmatprep.subr.mxu1 %v2447_v0 }
 0xe57   :  { %v753_v50 = vpop.f32.mrf.mxu1 }
 0xe58   :  { %v757_v4 = vadd.f32 %v753_v50, %v2605_v23  ;;  %v986_v50 = vsub.s32 1, %v981_v48 }
 0xe59   :  { %v2197_v51 = vpop.f32.mrf.mxu1 }
 0xe5a   :  { %2356 = vtanh.f32 %v757_v4  ;;  %v983_v4 = vrot.slane %v978_v49, %v982_v25  ;;  %v987_v51 = vrot.slane %v978_v49, %v986_v50 }
 0xe67   :  { %v2357_v52 = vpop.eup %2356 }
 0xe68   :  { %763 = vrot.lane.b32.xlu0 %v2357_v52, %s2449_s3  ;;  %v759_v53 = vmul.f32 0.5, %v2357_v52 }
 0xe6a   :  { %v760_v6 = vadd.f32 0.5, %v759_v53 }
 0xe6c   :  { %v761_v9 = vmul.f32 %v760_v6, %v675_v46 }
 0xeda   :  { %v764_v54 = vpop.permute.xlu0 %763 }
 0xedb   :  { %v766_v55 = vmul.f32 %v764_v54, %v760_v6 }
 0xedd   :  { %768 = vrot.lane.b32.xlu1 %v766_v55, %s2450_s6 }
 0xf4f   :  { %v769_v56 = vpop.permute.xlu1 %768 }
 0xf50   :  { %v771_v57 = vadd.f32 %v769_v56, %v761_v9 }
 0xf52   :  { %2358 = vtanh.f32 %v771_v57 }
 0xf5f   :  { %v2359_v10 = vpop.eup %2358 }
 0xf60   :  { %774 = vrot.lane.b32.xlu0 %v2359_v10, %s2449_s3 }
 0xfd2   :  { %v775_v58 = vpop.permute.xlu0 %774 }
 0xfd3   :  { %v777_v23 = vmul.f32 %v775_v58, %v760_v6 }
 0xfd5   :  { %779 = vrot.lane.b32.xlu1 %v777_v23, %s2450_s6 }
0x1047   :  { %v780_v59 = vpop.permute.xlu1 %779 }
0x1048   :  { %2207 = vmatmul.mubr.msk.f32.vlgmr.msra.gmra.mxu0 %vm203_vm3, %v780_v59 }
0x1049   :  { %1059 = vmatprep.mubr.f32.mxu0 %v2447_v0 }
0x1108   :  { %v849_v60 = vpop.f32.mrf.mxu0 }
0x1109   :  { %v853_v61 = vadd.f32 %v849_v60, %v2611_v30 }
0x110a   :  { %v2208_v62 = vpop.f32.mrf.mxu0 }
0x110b   :  { %2360 = vtanh.f32 %v853_v61 }
0x1118   :  { %v2361_v63 = vpop.eup %2360 }
0x1119   :  { %859 = vrot.lane.b32.xlu0 %v2361_v63, %s2449_s3  ;;  %v855_v1 = vmul.f32 0.5, %v2361_v63 }
0x111b   :  { %v856_v2 = vadd.f32 0.5, %v855_v1 }
0x111d   :  { %v857_v7 = vmul.f32 %v856_v2, %v771_v57 }
0x118b   :  { %v860_v3 = vpop.permute.xlu0 %859 }
0x118c   :  { %v862_v5 = vmul.f32 %v860_v3, %v856_v2 }
0x118e   :  { %864 = vrot.lane.b32.xlu1 %v862_v5, %s2450_s6 }
0x1200   :  { %v865_v8 = vpop.permute.xlu1 %864 }
0x1201   :  { %v867_v11 = vadd.f32 %v865_v8, %v857_v7 }
0x1203   :  { %2362 = vtanh.f32 %v867_v11 }
0x1210   :  { %v2363_v12 = vpop.eup %2362 }
0x1211   :  { %870 = vrot.lane.b32.xlu0 %v2363_v12, %s2449_s3 }
0x1283   :  { %v871_v13 = vpop.permute.xlu0 %870 }
0x1284   :  { %v873_v30 = vmul.f32 %v871_v13, %v856_v2 }
0x1286   :  { %875 = vrot.lane.b32.xlu1 %v873_v30, %s2450_s6 }
0x12f8   :  { %v876_v14 = vpop.permute.xlu1 %875 }
0x12f9   :  { %2218 = vmatmul.mubr.msk.f32.vlgmr.msra.gmra.mxu1 %vm203_vm3, %v876_v14 }
0x12fa   :  { %2228 = vmatprep.mubr.msk.f32.mxu1 %vm2448_vm0, %v2447_v0  ;;  %2221 = vmatpush3.msra.mxu1 %v2717_v33 }
0x12fb   :  { %2222 = vmatprep.subr.mxu1 %v2447_v0 }
0x12fc   :  { %2223 = vmatpush3.msra.mxu1 %v2726_v35 }
0x12fd   :  { %2224 = vmatprep.subr.mxu1 %v2447_v0 }
0x12fe   :  { %2225 = vmatpush3.msra.mxu1 %v2732_v37 }
0x12ff   :  { %2226 = vmatprep.subr.mxu1 %v2447_v0 }
0x1300   :  { %2227 = vmatpush3.msra.mxu1 %v2746_v41 }
0x1301   :  { %2229 = vmatmul.mubr.f32.vlgmr.msra.gmra.mxu1 %v2447_v0  ;;  %2242 = vmatprep.subr.mxu1 %v2447_v0 }
0x1302   :  { %2243 = vmatpush3.msra.mxu1 %v2717_v33  ;;  %2250 = vmatprep.mubr.msk.f32.mxu1 %vm2448_vm0, %v2447_v0 }
0x1303   :  { %2244 = vmatprep.subr.mxu1 %v2447_v0 }
0x1304   :  { %2245 = vmatpush3.msra.mxu1 %v2726_v35 }
0x1305   :  { %2246 = vmatprep.subr.mxu1 %v2447_v0 }
0x1306   :  { %2247 = vmatpush3.msra.mxu1 %v2732_v37 }
0x1307   :  { %2248 = vmatprep.subr.mxu1 %v2447_v0 }
0x1308   :  { %2249 = vmatpush3.msra.mxu1 %v2746_v41 }
0x1309   :  { %2264 = vmatprep.subr.mxu1 %v2447_v0 }
0x13b9   :  { %v945_v15 = vpop.f32.mrf.mxu1 }
0x13ba   :  { %v949_v16 = vadd.f32 %v945_v15, %v2609_v27  ;;  %v976_v27 = vld [vmem:[%s2961_s4 + $0x30] sm:$0xff] }
0x13bb   :  { %v2219_v17 = vpop.f32.mrf.mxu1  ;;  %1020 = vmatpush1.msra.mxu0 %v976_v27 }
0x13bc   :  { %2364 = vtanh.f32 %v949_v16  ;;  %1021 = vmatprep.subr.mxu0 %v975_v32 }
0x13bd   :  { %1022 = vmatpush1.msra.mxu0 %v974_v34 }
0x13be   :  { %1023 = vmatprep.subr.mxu0 %v973_v19 }
0x13bf   :  { %1024 = vmatpush1.msra.mxu0 %v972_v36 }
0x13c0   :  { %1025 = vmatprep.subr.mxu0 %v971_v38 }
0x13c1   :  { %1026 = vmatpush1.msra.mxu0 %v970_v39  ;;  %v1138_v45 = vpop.f32.mrf.mxu1 }
0x13c2   :  { %2231 = vmatprep.subr.mxu0 %v2447_v0 }
0x13c3   :  { %v2230_v46 = vpop.f32.mrf.mxu1 }
0x13c9   :  { %v2365_v18 = vpop.eup %2364 }
0x13ca   :  { %955 = vrot.lane.b32.xlu0 %v2365_v18, %s2449_s3  ;;  %v951_v20 = vmul.f32 0.5, %v2365_v18 }
0x13cc   :  { %v952_v21 = vadd.f32 0.5, %v951_v20 }
0x13ce   :  { %v953_v26 = vmul.f32 %v952_v21, %v867_v11 }
0x143c   :  { %v956_v22 = vpop.permute.xlu0 %955 }
0x143d   :  { %v958_v24 = vmul.f32 %v956_v22, %v952_v21 }
0x143f   :  { %960 = vrot.lane.b32.xlu1 %v958_v24, %s2450_s6 }
0x14b1   :  { %v961_v28 = vpop.permute.xlu1 %960 }
0x14b2   :  { %v963_v29 = vadd.f32 %v961_v28, %v953_v26 }
0x14b4   :  { %2366 = vtanh.f32 %v963_v29 }
0x14c1   :  { %v2367_v40 = vpop.eup %2366 }
0x14c2   :  { %966 = vrot.lane.b32.xlu0 %v2367_v40, %s2449_s3 }
0x1534   :  { %v967_v42 = vpop.permute.xlu0 %966 }
0x1535   :  { %v969_v43 = vmul.f32 %v967_v42, %v952_v21 }
0x1537   :  { %991 = vrot.lane.b32.xlu1 %v969_v43, %s2450_s6 }
0x15a9   :  { %v992_v44 = vpop.permute.xlu1 %991 }
0x15aa   :  { %2000 = vmatmul.mubr.msk.f32.vlgmr.msra.gmra.mxu0 %vm203_vm3, %v992_v44 }
0x15ab   :  { %2232 = vmatpush3.msra.mxu0 %v2717_v33  ;;  %2239 = vmatprep.mubr.msk.f32.mxu0 %vm2448_vm0, %v2447_v0 }
0x15ac   :  { %2233 = vmatprep.subr.mxu0 %v2447_v0 }
0x15ad   :  { %2234 = vmatpush3.msra.mxu0 %v2726_v35 }
0x15ae   :  { %2235 = vmatprep.subr.mxu0 %v2447_v0 }
0x15af   :  { %2236 = vmatpush3.msra.mxu0 %v2732_v37 }
0x15b0   :  { %2237 = vmatprep.subr.mxu0 %v2447_v0 }
0x15b1   :  { %2238 = vmatpush3.msra.mxu0 %v2746_v41 }
0x15b2   :  { %2253 = vmatprep.subr.mxu0 %v2447_v0 }
0x166a   :  { %v1061_v52 = vpop.f32.mrf.mxu0 }
0x166b   :  { %v2776_v53 = vadd.f32 %v1061_v52, %v983_v4 }
0x166c   :  { %v1063_v6 = vpop.f32.mrf.mxu0 }
0x166d   :  { %v1142_v54 = vadd.f32 %v1138_v45, %v2776_v53  ;;  %v1064_v55 = vadd.f32 %v1063_v6, %v987_v51 }
0x166f   :  { %2368 = vtanh.f32 %v1142_v54  ;;  %1067 = vst.msk [vmem:[#allocation5] sm:$0xff] %vm1066_vm4, %v1064_v55 }
0x167c   :  { %v2369_v9 = vpop.eup %2368 }
0x167d   :  { %1148 = vrot.lane.b32.xlu0 %v2369_v9, %s2449_s3  ;;  %v1144_v56 = vmul.f32 0.5, %v2369_v9 }
0x167f   :  { %v1145_v57 = vadd.f32 0.5, %v1144_v56 }
0x1681   :  { %v1146_v23 = vmul.f32 0.0, %v1145_v57 }
0x16ef   :  { %v1149_v10 = vpop.permute.xlu0 %1148 }
0x16f0   :  { %v1151_v58 = vmul.f32 %v1149_v10, %v1145_v57 }
0x16f2   :  { %1153 = vrot.lane.b32.xlu1 %v1151_v58, %s2450_s6 }
0x1764   :  { %v1154_v59 = vpop.permute.xlu1 %1153 }
0x1765   :  { %v1156_v60 = vadd.f32 %v1154_v59, %v1146_v23 }
0x1767   :  { %2370 = vtanh.f32 %v1156_v60 }
0x1774   :  { %v2371_v61 = vpop.eup %2370 }
0x1775   :  { %1159 = vrot.lane.b32.xlu0 %v2371_v61, %s2449_s3 }
0x17e7   :  { %v1160_v62 = vpop.permute.xlu0 %1159 }
0x17e8   :  { %v1162_v63 = vmul.f32 %v1160_v62, %v1145_v57 }
0x17ea   :  { %1164 = vrot.lane.b32.xlu1 %v1162_v63, %s2450_s6 }
0x185c   :  { %v2783_v1 = vpop.permute.xlu1 %1164 }
0x185d   :  { %2240 = vmatmul.mubr.msk.f32.vlgmr.msra.gmra.mxu0 %vm203_vm3, %v2783_v1 }
0x185e   :  { %2254 = vmatpush3.msra.mxu0 %v2717_v33  ;;  %2261 = vmatprep.mubr.msk.f32.mxu0 %vm2448_vm0, %v2447_v0 }
0x185f   :  { %2255 = vmatprep.subr.mxu0 %v2447_v0 }
0x1860   :  { %2256 = vmatpush3.msra.mxu0 %v2726_v35 }
0x1861   :  { %2257 = vmatprep.subr.mxu0 %v2447_v0 }
0x1862   :  { %2258 = vmatpush3.msra.mxu0 %v2732_v37 }
0x1863   :  { %2259 = vmatprep.subr.mxu0 %v2447_v0 }
0x1864   :  { %2260 = vmatpush3.msra.mxu0 %v2746_v41 }
0x1865   :  { %2275 = vmatprep.subr.mxu0 %v2447_v0 }
0x191d   :  { %v1234_v2 = vpop.f32.mrf.mxu0 }
0x191e   :  { %v1238_v3 = vadd.f32 %v1234_v2, %v2776_v53 }
0x191f   :  { %v2241_v5 = vpop.f32.mrf.mxu0 }
0x1920   :  { %2372 = vtanh.f32 %v1238_v3 }
0x192d   :  { %v2373_v7 = vpop.eup %2372 }
0x192e   :  { %1244 = vrot.lane.b32.xlu0 %v2373_v7, %s2449_s3  ;;  %v1240_v8 = vmul.f32 0.5, %v2373_v7 }
0x1930   :  { %v1241_v11 = vadd.f32 0.5, %v1240_v8 }
0x1932   :  { %v1242_v30 = vmul.f32 %v1241_v11, %v1156_v60 }
0x19a0   :  { %v1245_v12 = vpop.permute.xlu0 %1244 }
0x19a1   :  { %v1247_v13 = vmul.f32 %v1245_v12, %v1241_v11 }
0x19a3   :  { %1249 = vrot.lane.b32.xlu1 %v1247_v13, %s2450_s6 }
0x1a15   :  { %v1250_v14 = vpop.permute.xlu1 %1249 }
0x1a16   :  { %v1252_v15 = vadd.f32 %v1250_v14, %v1242_v30 }
0x1a18   :  { %2374 = vtanh.f32 %v1252_v15 }
0x1a25   :  { %v2375_v16 = vpop.eup %2374 }
0x1a26   :  { %1255 = vrot.lane.b32.xlu0 %v2375_v16, %s2449_s3 }
0x1a98   :  { %v1256_v17 = vpop.permute.xlu0 %1255 }
0x1a99   :  { %v1258_v18 = vmul.f32 %v1256_v17, %v1241_v11 }
0x1a9b   :  { %1260 = vrot.lane.b32.xlu1 %v1258_v18, %s2450_s6 }
0x1b0d   :  { %v2802_v20 = vpop.permute.xlu1 %1260 }
0x1b0e   :  { %2251 = vmatmul.mubr.msk.f32.vlgmr.msra.gmra.mxu1 %vm203_vm3, %v2802_v20 }
0x1b0f   :  { %2265 = vmatpush3.msra.mxu1 %v2717_v33  ;;  %2272 = vmatprep.mubr.msk.f32.mxu1 %vm2448_vm0, %v2447_v0 }
0x1b10   :  { %2266 = vmatprep.subr.mxu1 %v2447_v0 }
0x1b11   :  { %2267 = vmatpush3.msra.mxu1 %v2726_v35 }
0x1b12   :  { %2268 = vmatprep.subr.mxu1 %v2447_v0 }
0x1b13   :  { %2269 = vmatpush3.msra.mxu1 %v2732_v37 }
0x1b14   :  { %2270 = vmatprep.subr.mxu1 %v2447_v0 }
0x1b15   :  { %2271 = vmatpush3.msra.mxu1 %v2746_v41 }
0x1b16   :  { %2286 = vmatprep.subr.mxu1 %v2447_v0 }
0x1bce   :  { %v1330_v21 = vpop.f32.mrf.mxu1 }
0x1bcf   :  { %v1334_v22 = vadd.f32 %v1330_v21, %v2776_v53  ;;  %v1837_v21 = vld [vmem:[%s2964_s7 + $0x10] sm:$0xff] }
0x1bd0   :  { %v2252_v24 = vpop.f32.mrf.mxu1 }
0x1bd1   :  { %2376 = vtanh.f32 %v1334_v22  ;;  %v1836_v22 = vld [vmem:[%s2964_s7 + $0x8] sm:$0xff]  ;;  %v1835_v24 = vld [vmem:[%s2964_s7] sm:$0xff] }
0x1bde   :  { %v2377_v26 = vpop.eup %2376 }
0x1bdf   :  { %1340 = vrot.lane.b32.xlu0 %v2377_v26, %s2449_s3  ;;  %v1336_v28 = vmul.f32 0.5, %v2377_v26 }
0x1be1   :  { %v1337_v29 = vadd.f32 0.5, %v1336_v28 }
0x1be3   :  { %v1338_v32 = vmul.f32 %v1337_v29, %v1252_v15 }
0x1c51   :  { %v1341_v31 = vpop.permute.xlu0 %1340 }
0x1c52   :  { %v1343_v27 = vmul.f32 %v1341_v31, %v1337_v29 }
0x1c54   :  { %1345 = vrot.lane.b32.xlu1 %v1343_v27, %s2450_s6 }
0x1cc6   :  { %v1346_v34 = vpop.permute.xlu1 %1345 }
0x1cc7   :  { %v1348_v19 = vadd.f32 %v1346_v34, %v1338_v32 }
0x1cc9   :  { %2378 = vtanh.f32 %v1348_v19 }
0x1cd6   :  { %v2379_v36 = vpop.eup %2378 }
0x1cd7   :  { %1351 = vrot.lane.b32.xlu0 %v2379_v36, %s2449_s3 }
0x1d49   :  { %v1352_v38 = vpop.permute.xlu0 %1351 }
0x1d4a   :  { %v1354_v39 = vmul.f32 %v1352_v38, %v1337_v29  ;;  %v2900_v29 = vld [vmem:[%s2965_s8] ss:$0 sm:$0xff] }
0x1d4c   :  { %1356 = vrot.lane.b32.xlu1 %v1354_v39, %s2450_s6 }
0x1dbe   :  { %v2821_v40 = vpop.permute.xlu1 %1356 }
0x1dbf   :  { %2262 = vmatmul.mubr.msk.f32.vlgmr.msra.gmra.mxu0 %vm203_vm3, %v2821_v40 }
0x1dc0   :  { %2276 = vmatpush3.msra.mxu0 %v2717_v33  ;;  %2283 = vmatprep.mubr.msk.f32.mxu0 %vm2448_vm0, %v2447_v0 }
0x1dc1   :  { %2277 = vmatprep.subr.mxu0 %v2447_v0 }
0x1dc2   :  { %2278 = vmatpush3.msra.mxu0 %v2726_v35 }
0x1dc3   :  { %2279 = vmatprep.subr.mxu0 %v2447_v0 }
0x1dc4   :  { %2280 = vmatpush3.msra.mxu0 %v2732_v37 }
0x1dc5   :  { %2281 = vmatprep.subr.mxu0 %v2447_v0 }
0x1dc6   :  { %2282 = vmatpush3.msra.mxu0 %v2746_v41 }
0x1dc7   :  { %2297 = vmatprep.subr.mxu0 %v2447_v0 }
0x1e7f   :  { %v1426_v42 = vpop.f32.mrf.mxu0 }
0x1e80   :  { %v1430_v43 = vadd.f32 %v1426_v42, %v2776_v53 }
0x1e81   :  { %v2263_v44 = vpop.f32.mrf.mxu0 }
0x1e82   :  { %2380 = vtanh.f32 %v1430_v43 }
0x1e8f   :  { %v2381_v45 = vpop.eup %2380 }
0x1e90   :  { %1436 = vrot.lane.b32.xlu0 %v2381_v45, %s2449_s3  ;;  %v1432_v46 = vmul.f32 0.5, %v2381_v45 }
0x1e92   :  { %v1433_v47 = vadd.f32 0.5, %v1432_v46 }
0x1e94   :  { %v1434_v49 = vmul.f32 %v1433_v47, %v1348_v19 }
0x1f02   :  { %v1437_v48 = vpop.permute.xlu0 %1436 }
0x1f03   :  { %v1439_v25 = vmul.f32 %v1437_v48, %v1433_v47 }
0x1f05   :  { %1441 = vrot.lane.b32.xlu1 %v1439_v25, %s2450_s6 }
0x1f77   :  { %v1442_v50 = vpop.permute.xlu1 %1441 }
0x1f78   :  { %v1444_v4 = vadd.f32 %v1442_v50, %v1434_v49 }
0x1f7a   :  { %2382 = vtanh.f32 %v1444_v4 }
0x1f87   :  { %v2383_v51 = vpop.eup %2382 }
0x1f88   :  { %1447 = vrot.lane.b32.xlu0 %v2383_v51, %s2449_s3 }
0x1ffa   :  { %v1448_v52 = vpop.permute.xlu0 %1447 }
0x1ffb   :  { %v1450_v6 = vmul.f32 %v1448_v52, %v1433_v47 }
0x1ffd   :  { %1452 = vrot.lane.b32.xlu1 %v1450_v6, %s2450_s6 }
0x206f   :  { %v2840_v54 = vpop.permute.xlu1 %1452 }
0x2070   :  { %2273 = vmatmul.mubr.msk.f32.vlgmr.msra.gmra.mxu1 %vm203_vm3, %v2840_v54 }
0x2071   :  { %2287 = vmatpush3.msra.mxu1 %v2717_v33  ;;  %2294 = vmatprep.mubr.msk.f32.mxu1 %vm2448_vm0, %v2447_v0 }
0x2072   :  { %2288 = vmatprep.subr.mxu1 %v2447_v0 }
0x2073   :  { %2289 = vmatpush3.msra.mxu1 %v2726_v35 }
0x2074   :  { %2290 = vmatprep.subr.mxu1 %v2447_v0 }
0x2075   :  { %2291 = vmatpush3.msra.mxu1 %v2732_v37 }
0x2076   :  { %2292 = vmatprep.subr.mxu1 %v2447_v0 }
0x2077   :  { %2293 = vmatpush3.msra.mxu1 %v2746_v41 }
0x2130   :  { %v1522_v55 = vpop.f32.mrf.mxu1 }
0x2131   :  { %v1526_v9 = vadd.f32 %v1522_v55, %v2776_v53 }
0x2132   :  { %v2274_v56 = vpop.f32.mrf.mxu1 }
0x2133   :  { %2384 = vtanh.f32 %v1526_v9 }
0x2140   :  { %v2385_v57 = vpop.eup %2384 }
0x2141   :  { %1532 = vrot.lane.b32.xlu0 %v2385_v57, %s2449_s3  ;;  %v1528_v10 = vmul.f32 0.5, %v2385_v57 }
0x2143   :  { %v1529_v58 = vadd.f32 0.5, %v1528_v10 }
0x2145   :  { %v1530_v60 = vmul.f32 %v1529_v58, %v1444_v4 }
0x21b3   :  { %v1533_v23 = vpop.permute.xlu0 %1532 }
0x21b4   :  { %v1535_v59 = vmul.f32 %v1533_v23, %v1529_v58 }
0x21b6   :  { %1537 = vrot.lane.b32.xlu1 %v1535_v59, %s2450_s6 }
0x2228   :  { %v1538_v61 = vpop.permute.xlu1 %1537 }
0x2229   :  { %v1540_v62 = vadd.f32 %v1538_v61, %v1530_v60 }
0x222b   :  { %2386 = vtanh.f32 %v1540_v62 }
0x2238   :  { %v2387_v63 = vpop.eup %2386 }
0x2239   :  { %1543 = vrot.lane.b32.xlu0 %v2387_v63, %s2449_s3 }
0x22ab   :  { %v1544_v2 = vpop.permute.xlu0 %1543 }
0x22ac   :  { %v1546_v3 = vmul.f32 %v1544_v2, %v1529_v58 }
0x22ae   :  { %1548 = vrot.lane.b32.xlu1 %v1546_v3, %s2450_s6 }
0x2320   :  { %v1549_v5 = vpop.permute.xlu1 %1548 }
0x2321   :  { %2284 = vmatmul.mubr.msk.f32.vlgmr.msra.gmra.mxu0 %vm203_vm3, %v1549_v5 }
0x2322   :  { %2298 = vmatpush3.msra.mxu0 %v2717_v33  ;;  %2305 = vmatprep.mubr.msk.f32.mxu0 %vm2448_vm0, %v2447_v0 }
0x2323   :  { %2299 = vmatprep.subr.mxu0 %v2447_v0 }
0x2324   :  { %2300 = vmatpush3.msra.mxu0 %v2726_v35 }
0x2325   :  { %2301 = vmatprep.subr.mxu0 %v2447_v0 }
0x2326   :  { %2302 = vmatpush3.msra.mxu0 %v2732_v37 }
0x2327   :  { %2303 = vmatprep.subr.mxu0 %v2447_v0  ;;  %v1838_v0 = vld [vmem:[%s2964_s7 + $0x18] sm:$0xff] }
0x2328   :  { %2304 = vmatpush3.msra.mxu0 %v2746_v41  ;;  %2308 = vmatprep.subr.mxu1 %v1838_v0 }
0x23e1   :  { %v1618_v7 = vpop.f32.mrf.mxu0 }
0x23e2   :  { %v1622_v8 = vadd.f32 %v1618_v7, %v2776_v53 }
0x23e3   :  { %v2285_v11 = vpop.f32.mrf.mxu0 }
0x23e4   :  { %2388 = vtanh.f32 %v1622_v8 }
0x23f1   :  { %v2389_v33 = vpop.eup %2388 }
0x23f2   :  { %1628 = vrot.lane.b32.xlu0 %v2389_v33, %s2449_s3  ;;  %v1624_v12 = vmul.f32 0.5, %v2389_v33 }
0x23f4   :  { %v1625_v13 = vadd.f32 0.5, %v1624_v12 }
0x23f6   :  { %v1626_v14 = vmul.f32 %v1625_v13, %v1540_v62 }
0x2464   :  { %v1629_v30 = vpop.permute.xlu0 %1628 }
0x2465   :  { %v1631_v35 = vmul.f32 %v1629_v30, %v1625_v13 }
0x2467   :  { %1633 = vrot.lane.b32.xlu1 %v1631_v35, %s2450_s6 }
0x24d9   :  { %v1634_v37 = vpop.permute.xlu1 %1633 }
0x24da   :  { %v1636_v15 = vadd.f32 %v1634_v37, %v1626_v14 }
0x24dc   :  { %2390 = vtanh.f32 %v1636_v15 }
0x24e9   :  { %v2391_v41 = vpop.eup %2390 }
0x24ea   :  { %1639 = vrot.lane.b32.xlu0 %v2391_v41, %s2449_s3 }
0x255c   :  { %v1640_v16 = vpop.permute.xlu0 %1639 }
0x255d   :  { %v1642_v17 = vmul.f32 %v1640_v16, %v1625_v13 }
0x255f   :  { %1644 = vrot.lane.b32.xlu1 %v1642_v17, %s2450_s6 }
0x25d1   :  { %v1645_v18 = vpop.permute.xlu1 %1644 }
0x25d2   :  { %2295 = vmatmul.mubr.msk.f32.vlgmr.msra.gmra.mxu1 %vm203_vm3, %v1645_v18 }
0x25d3   :  { %2309 = vmatpush3.msra.mxu1 %v1838_v0  ;;  %2316 = vmatprep.mubr.msk.f32.mxu1 %vm203_vm3, %v2783_v1 }
0x25d4   :  { %2310 = vmatprep.subr.mxu1 %v1837_v21 }
0x25d5   :  { %2311 = vmatpush3.msra.mxu1 %v1837_v21 }
0x25d6   :  { %2312 = vmatprep.subr.mxu1 %v1836_v22 }
0x25d7   :  { %2313 = vmatpush3.msra.mxu1 %v1836_v22 }
0x25d8   :  { %2314 = vmatprep.subr.mxu1 %v1835_v24 }
0x25d9   :  { %2315 = vmatpush3.msra.mxu1 %v1835_v24 }
0x25da   :  { %2317 = vmatmul.mubr.msk.f32.vlgmr.msra.gmra.mxu1 %vm203_vm3, %v2802_v20 }
0x25db   :  { %2319 = vmatprep.mubr.msk.f32.mxu1 %vm203_vm3, %v2821_v40 }
0x25de   :  { %2320 = vmatmul.mubr.msk.f32.gmra.mxu1 %vm203_vm3, %v2840_v54 }
0x25df   :  { %2322 = vmatprep.mubr.msk.f32.mxu1 %vm203_vm3, %v1549_v5 }
0x25e2   :  { %2323 = vmatmul.mubr.msk.f32.gmra.mxu1 %vm203_vm3, %v1645_v18 }
0x2692   :  { %v1714_v1 = vpop.f32.mrf.mxu1 }
0x2693   :  { %v1718_v26 = vadd.f32 %v1714_v1, %v2776_v53 }
0x2694   :  { %v2296_v28 = vpop.f32.mrf.mxu1 }
0x2695   :  { %2392 = vtanh.f32 %v1718_v26 }
0x269a   :  { %v2318_v20 = vpop.f32.mrf.mxu1 }
0x269b   :  { %v1923_v31 = vadd.f32 %v2318_v20, %v2900_v29 }
0x269c   :  { %v1917_v27 = vpop.f32.mrf.mxu1 }
0x269d   :  { %1957 = vst.msk [vmem:[%s2966_s9 + $0x8] sm:$0xff] %vm65_vm2, %v1923_v31  ;;  %v1918_v32 = vadd.f32 %v2900_v29, %v1917_v27 }
0x269e   :  { %v2321_v34 = vpop.f32.mrf.mxu1 }
0x269f   :  { %1956 = vst.msk [vmem:[%s2966_s9] sm:$0xff] %vm65_vm2, %v1918_v32  ;;  %v1933_v19 = vadd.f32 %v2321_v34, %v2900_v29 }
0x26a0   :  { %v1927_v36 = vpop.f32.mrf.mxu1 }
0x26a1   :  { %1959 = vst.msk [vmem:[%s2966_s9 + $0x18] sm:$0xff] %vm65_vm2, %v1933_v19  ;;  %v1928_v38 = vadd.f32 %v2900_v29, %v1927_v36 }
0x26a2   :  { %v2393_v39 = vpop.eup %2392  ;;  %v2324_v40 = vpop.f32.mrf.mxu1 }
0x26a3   :  { %1958 = vst.msk [vmem:[%s2966_s9 + $0x10] sm:$0xff] %vm65_vm2, %v1928_v38  ;;  %v1943_v42 = vadd.f32 %v2324_v40, %v2900_v29  ;;  %1724 = vrot.lane.b32.xlu0 %v2393_v39, %s2449_s3  ;;  %v1720_v45 = vmul.f32 0.5, %v2393_v39 }
0x26a4   :  { %v1937_v43 = vpop.f32.mrf.mxu1 }
0x26a5   :  { %1961 = vst.msk [vmem:[%s2966_s9 + $0x28] sm:$0xff] %vm65_vm2, %v1943_v42  ;;  %v1938_v44 = vadd.f32 %v2900_v29, %v1937_v43  ;;  %v1721_v46 = vadd.f32 0.5, %v1720_v45 }
0x26a7   :  { %1960 = vst.msk [vmem:[%s2966_s9 + $0x20] sm:$0xff] %vm65_vm2, %v1938_v44  ;;  %v1722_v25 = vmul.f32 %v1721_v46, %v1636_v15 }
0x2715   :  { %v1725_v47 = vpop.permute.xlu0 %1724 }
0x2716   :  { %v1727_v48 = vmul.f32 %v1725_v47, %v1721_v46 }
0x2718   :  { %1729 = vrot.lane.b32.xlu1 %v1727_v48, %s2450_s6 }
0x278a   :  { %v1730_v49 = vpop.permute.xlu1 %1729 }
0x278b   :  { %v1732_v50 = vadd.f32 %v1730_v49, %v1722_v25 }
0x278d   :  { %2394 = vtanh.f32 %v1732_v50 }
0x279a   :  { %v2395_v4 = vpop.eup %2394 }
0x279b   :  { %1735 = vrot.lane.b32.xlu0 %v2395_v4, %s2449_s3 }
0x280d   :  { %v1736_v51 = vpop.permute.xlu0 %1735 }
0x280e   :  { %v1738_v52 = vmul.f32 %v1736_v51, %v1721_v46 }
0x2810   :  { %1740 = vrot.lane.b32.xlu1 %v1738_v52, %s2450_s6 }
0x2882   :  { %v1741_v6 = vpop.permute.xlu1 %1740 }
0x2883   :  { %2306 = vmatmul.mubr.msk.f32.vlgmr.msra.gmra.mxu0 %vm203_vm3, %v1741_v6  ;;  %2325 = vmatprep.mubr.msk.f32.mxu1 %vm203_vm3, %v1741_v6 }
0x2943   :  { %v1810_v54 = vpop.f32.mrf.mxu0 }
0x2944   :  { %v1814_v55 = vadd.f32 %v1810_v54, %v2776_v53 }
0x2945   :  { %v2307_v9 = vpop.f32.mrf.mxu0 }
0x2946   :  { %2396 = vtanh.f32 %v1814_v55 }
0x2953   :  { %v2397_v56 = vpop.eup %2396 }
0x2954   :  { %1820 = vrot.lane.b32.xlu0 %v2397_v56, %s2449_s3  ;;  %v1816_v57 = vmul.f32 0.5, %v2397_v56 }
0x2956   :  { %v1817_v10 = vadd.f32 0.5, %v1816_v57 }
0x2958   :  { %v1818_v59 = vmul.f32 %v1817_v10, %v1732_v50 }
0x29c6   :  { %v1821_v58 = vpop.permute.xlu0 %1820 }
0x29c7   :  { %v1823_v23 = vmul.f32 %v1821_v58, %v1817_v10 }
0x29c9   :  { %1825 = vrot.lane.b32.xlu1 %v1823_v23, %s2450_s6 }
0x2a3b   :  { %v1826_v60 = vpop.permute.xlu1 %1825 }
0x2a3c   :  { %v1828_v61 = vadd.f32 %v1826_v60, %v1818_v59 }
0x2a3e   :  { %2398 = vtanh.f32 %v1828_v61 }
0x2a4b   :  { %v2399_v62 = vpop.eup %2398 }
0x2a4c   :  { %1831 = vrot.lane.b32.xlu0 %v2399_v62, %s2449_s3 }
0x2abe   :  { %v1832_v63 = vpop.permute.xlu0 %1831 }
0x2abf   :  { %v1834_v53 = vmul.f32 %v1832_v63, %v1817_v10 }
0x2ac1   :  { %1847 = vrot.lane.b32.xlu1 %v1834_v53, %s2450_s6 }
0x2b33   :  { %v1848_v2 = vpop.permute.xlu1 %1847 }
0x2b34   :  { %2326 = vmatmul.mubr.msk.f32.gmra.mxu1 %vm203_vm3, %v1848_v2 }
0x2b35   :  { %2431 = shalt.err (!%p2428_p9)
}
0x2b36   :  { %1975 = dma.vmem_to_hbm [thread:$0]  %s1973_s17, 128, %s2967_s10, [#allocation4]  }
0x2bf4   :  { %v2327_v3 = vpop.f32.mrf.mxu1 }
0x2bf5   :  { %v1953_v5 = vadd.f32 %v2327_v3, %v2900_v29 }
0x2bf6   :  { %v1947_v7 = vpop.f32.mrf.mxu1 }
0x2bf7   :  { %1963 = vst.msk [vmem:[%s2966_s9 + $0x38] sm:$0xff] %vm65_vm2, %v1953_v5  ;;  %v1948_v8 = vadd.f32 %v2900_v29, %v1947_v7 }
0x2bf9   :  { %1962 = vst.msk [vmem:[%s2966_s9 + $0x30] sm:$0xff] %vm65_vm2, %v1948_v8 }
0x2bfa   :  { %2442 = dma.done.wait [#allocation4], 128  }
0x2bfb   :  { %2443 = vsyncadd [#allocation4], 4294967168 }
0x2bfc   :  { %1981 = vsyncpa [#allocation3], 1 }
0x2bfd   :  { %1982 = vsyncpa [#allocation4], 1 }

</bundles_post_ra>
